<compile_context>
chip_gen: v5e
topology: v5e:2x2
jax: 0.10.0
libtpu: 0.0.40
codegen_flags: <defaults>
</compile_context>

<pallas_src>
import functools
import math

import jax
import jax.numpy as jnp
import numpy as np
from jax.experimental import pallas as pl
from jax.experimental.pallas import tpu as pltpu  # noqa: F401  (grid-less kernel; kept for parity)

D_MODEL = 32
HEADS = 4
D_K = D_MODEL // HEADS
D_FF = 2048          # FeedForward default hidden size from the reference module
EPS = 1e-6           # Norm eps
NEG_INF = -1e9

# ---- lane offsets inside the packed bf16 weight slab (all 128-aligned) ----
W_A1_QKV = 0                       # (D, 3D) fused self-attn Q/K/V
W_A1_O   = 128                     # (D, D)
W_A2_Q   = 256                     # (D, D)
W_A2_KV  = 384                     # (D, 2D) fused cross-attn K/V
W_A2_O   = 512                     # (D, D)
W_FF1    = 640                     # (D, D_FF)
W_FF2T   = W_FF1 + D_FF            # (D, D_FF)  ff_w2 TRANSPOSED (lane-dense)
W_SLAB_LANES = W_FF2T + D_FF       # 4736 = 37 * 128

# ---- rows / lane offsets inside the packed f32 param slab (3, D_FF) ----
P_ROW_FF1B = 0                     # row 0: ff bias 1 (D_FF wide)
P_ROW_BIAS = 1                     # row 1: all small biases
P_ROW_NORM = 2                     # row 2: norm alpha/bias triplets
B_A1_QKV = 0                       # width 3D
B_A1_O   = 128
B_A2_Q   = 256
B_A2_KV  = 384                     # width 2D
B_A2_O   = 512
B_FF2    = 640
N_STRIDE = 256                     # norm i: alpha at i*256, bias at i*256 + 128


# ---------------------------------------------------------------------------
# The fused decoder-layer kernel (whole batch, no grid).
# ---------------------------------------------------------------------------
def decoder_layer_kernel(x_ref, e_ref, mask_ref, w_ref, p_ref,
                         out_x_ref, out_attn_ref, *, batch, s_q, s_kv):
    f32, bf16 = jnp.float32, jnp.bfloat16
    HS = HEADS * s_q

    # Head block mask, built once from iota (no extra operand, no integer div):
    # head_mask[h*S + i, c] = 1.0 iff column c belongs to head h.
    rows = jax.lax.broadcasted_iota(jnp.int32, (HS, D_MODEL), 0).astype(f32)
    cols = jax.lax.broadcasted_iota(jnp.int32, (HS, D_MODEL), 1).astype(f32)
    head_mask = jnp.where(jnp.floor(rows * (1.0 / s_q)) ==
                          jnp.floor(cols * (1.0 / D_K)), 1.0, 0.0)          # (H*S, D)
    q_mask = head_mask * (1.0 / math.sqrt(D_K))   # folds the 1/sqrt(d_k) score scale

    def layer_norm(t, idx):
        # torch: alpha * (x - mean) / (std + eps) + bias, *unbiased* (n-1) std.
        alpha = p_ref[P_ROW_NORM:P_ROW_NORM + 1,
                      idx * N_STRIDE: idx * N_STRIDE + D_MODEL]
        beta = p_ref[P_ROW_NORM:P_ROW_NORM + 1,
                     idx * N_STRIDE + 128: idx * N_STRIDE + 128 + D_MODEL]
        mean = jnp.mean(t, axis=-1, keepdims=True)
        c = t - mean
        var = jnp.sum(c * c, axis=-1, keepdims=True) * (1.0 / (D_MODEL - 1))
        inv = pl.reciprocal(jnp.sqrt(var) + EPS, approx=False)   # exact (cheap here)
        return alpha * (c * inv) + beta

    def pdot(a, b):                 # bf16 MXU inputs, f32 accumulation
        return jnp.dot(a.astype(bf16), b, preferred_element_type=f32)

    def attention(q, k, v, bias):
        # q: (S, D) f32; k, v: (Sk, D) bf16; bias broadcastable to (H*S, Sk) f32.
        # All heads in one MXU pass via the block mask (no head split/merge relayout).
        qp = (jnp.concatenate([q] * HEADS, axis=0) * q_mask).astype(bf16)   # (H*S, D)
        scores = jax.lax.dot_general(qp, k, (((1,), (1,)), ((), ())),
                                     preferred_element_type=f32)            # (H*S, Sk)
        scores = scores + bias
        m = jnp.max(scores, axis=-1, keepdims=True)
        p = jnp.exp(scores - m)
        probs = p * pl.reciprocal(jnp.sum(p, axis=-1, keepdims=True), approx=True)
        ctx_full = pdot(probs, v)                                           # (H*S, D)
        masked = ctx_full * head_mask          # keep only each head's own columns
        ctx = masked[0:s_q, :]
        for h in range(1, HEADS):
            ctx = ctx + masked[h * s_q:(h + 1) * s_q, :]                    # (S, D)
        return probs, ctx

    x = x_ref[...]                                # (B*S, D) f32 residual stream

    # ---------------- block 1: masked self-attention ----------------
    x2 = layer_norm(x, 0)
    qkv = pdot(x2, w_ref[:, W_A1_QKV:W_A1_QKV + 3 * D_MODEL]) \
        + p_ref[P_ROW_BIAS:P_ROW_BIAS + 1, B_A1_QKV:B_A1_QKV + 3 * D_MODEL]   # (B*S, 3D)
    ctx_rows = []
    for b in range(batch):                         # static, unrolled (B is tiny)
        r0 = b * s_q
        q_b = qkv[r0:r0 + s_q, 0:D_MODEL]
        k_b = qkv[r0:r0 + s_q, D_MODEL:2 * D_MODEL].astype(bf16)
        v_b = qkv[r0:r0 + s_q, 2 * D_MODEL:3 * D_MODEL].astype(bf16)
        trg_bias = jnp.concatenate([mask_ref[r0:r0 + s_q, 0:s_q]] * HEADS, axis=0)
        _, ctx_b = attention(q_b, k_b, v_b, trg_bias)
        ctx_rows.append(ctx_b)
    ctx = jnp.concatenate(ctx_rows, axis=0)                                    # (B*S, D)
    x = x + pdot(ctx, w_ref[:, W_A1_O:W_A1_O + D_MODEL]) \
          + p_ref[P_ROW_BIAS:P_ROW_BIAS + 1, B_A1_O:B_A1_O + D_MODEL]

    # ---------------- block 2: cross ("context") attention ----------------
    x2 = layer_norm(x, 1)
    q = pdot(x2, w_ref[:, W_A2_Q:W_A2_Q + D_MODEL]) \
      + p_ref[P_ROW_BIAS:P_ROW_BIAS + 1, B_A2_Q:B_A2_Q + D_MODEL]              # (B*S, D)
    kv = pdot(e_ref[...], w_ref[:, W_A2_KV:W_A2_KV + 2 * D_MODEL]) \
       + p_ref[P_ROW_BIAS:P_ROW_BIAS + 1, B_A2_KV:B_A2_KV + 2 * D_MODEL]       # (B*Se, 2D)
    ctx_rows = []
    for b in range(batch):
        q_b = q[b * s_q:(b + 1) * s_q, :]
        k_b = kv[b * s_kv:(b + 1) * s_kv, 0:D_MODEL].astype(bf16)
        v_b = kv[b * s_kv:(b + 1) * s_kv, D_MODEL:2 * D_MODEL].astype(bf16)
        src_bias = mask_ref[batch * s_q + b: batch * s_q + b + 1, 0:s_kv]      # (1, Se)
        probs_b, ctx_b = attention(q_b, k_b, v_b, src_bias)
        out_attn_ref[b * HS:(b + 1) * HS, :] = probs_b        # rows = (h, i) pairs
        ctx_rows.append(ctx_b)
    ctx = jnp.concatenate(ctx_rows, axis=0)
    x = x + pdot(ctx, w_ref[:, W_A2_O:W_A2_O + D_MODEL]) \
          + p_ref[P_ROW_BIAS:P_ROW_BIAS + 1, B_A2_O:B_A2_O + D_MODEL]

    # ---------------- block 3: feed-forward ----------------
    x2 = layer_norm(x, 2)
    hidden = pdot(x2, w_ref[:, W_FF1:W_FF1 + D_FF]) \
           + p_ref[P_ROW_FF1B:P_ROW_FF1B + 1, 0:D_FF]                          # (B*S, D_FF)
    hidden = jnp.maximum(hidden, 0.0)                                          # ReLU
    # ff_w2 stored transposed (D, D_FF), lane-dense: contract dim 1 of both.
    y = jax.lax.dot_general(hidden.astype(bf16), w_ref[:, W_FF2T:W_FF2T + D_FF],
                            (((1,), (1,)), ((), ())), preferred_element_type=f32)
    x = x + y + p_ref[P_ROW_BIAS:P_ROW_BIAS + 1, B_FF2:B_FF2 + D_MODEL]

    out_x_ref[...] = x


# ---------------------------------------------------------------------------
# Wrapper: operand packing, bf16 casts, additive masks, layout plumbing.
# ---------------------------------------------------------------------------
def _pack_params(params):
    norm_p, a1w, a1b, a2w, a2b, ffw1, ffb1, ffw2, ffb2 = params

    def lane_pad(w, width):
        return jnp.pad(w, ((0, 0), (0, width - w.shape[1])))

    # One lane-dense bf16 weight slab, sub-blocks 128-aligned (static slices in-kernel).
    w_slab = jnp.concatenate([
        lane_pad(jnp.concatenate([a1w[0], a1w[1], a1w[2]], axis=1), 128),   # W_A1_QKV
        lane_pad(a1w[3], 128),                                              # W_A1_O
        lane_pad(a2w[0], 128),                                              # W_A2_Q
        lane_pad(jnp.concatenate([a2w[1], a2w[2]], axis=1), 128),           # W_A2_KV
        lane_pad(a2w[3], 128),                                              # W_A2_O
        ffw1,                                                               # W_FF1
        ffw2.T,                                                             # W_FF2T (lane-dense)
    ], axis=1).astype(jnp.bfloat16)                        # (D, 4736)
    assert w_slab.shape == (D_MODEL, W_SLAB_LANES)

    def fill(row, off, vec):
        v = jnp.asarray(vec).reshape(-1)
        return row.at[off:off + v.shape[0]].set(v)

    row_ff1b = jnp.asarray(ffb1).reshape(-1)               # (D_FF,)
    row_bias = jnp.zeros((D_FF,), jnp.float32)
    row_bias = fill(row_bias, B_A1_QKV, jnp.concatenate([a1b[0], a1b[1], a1b[2]]))
    row_bias = fill(row_bias, B_A1_O, a1b[3])
    row_bias = fill(row_bias, B_A2_Q, a2b[0])
    row_bias = fill(row_bias, B_A2_KV, jnp.concatenate([a2b[1], a2b[2]]))
    row_bias = fill(row_bias, B_A2_O, a2b[3])
    row_bias = fill(row_bias, B_FF2, ffb2)
    row_norm = jnp.zeros((D_FF,), jnp.float32)
    for i in range(3):
        row_norm = fill(row_norm, i * N_STRIDE, norm_p[i, 0])
        row_norm = fill(row_norm, i * N_STRIDE + 128, norm_p[i, 1])
    p_slab = jnp.stack([row_ff1b, row_bias, row_norm], axis=0)   # (3, D_FF) f32
    return w_slab, p_slab


def _pack_masks(src_mask, trg_mask, B, S, Se):
    # Additive biases (0 attend / -1e9 masked), NO per-head broadcast.
    trg_bias = jnp.where(trg_mask == 0.0, NEG_INF, 0.0).astype(jnp.float32).reshape(B * S, S)
    src_bias = jnp.where(src_mask == 0.0, NEG_INF, 0.0).astype(jnp.float32).reshape(B, Se)
    W = max(S, Se)
    return jnp.concatenate([jnp.pad(trg_bias, ((0, 0), (0, W - S))),
                            jnp.pad(src_bias, ((0, 0), (0, W - Se)))], axis=0)  # (B*S+B, W)


def decoder_layer_pallas(x, e_outputs, src_mask, trg_mask, params):
    B, S, D = x.shape
    Se = e_outputs.shape[1]
    assert D == D_MODEL
    w_slab, p_slab = _pack_params(params)
    mask_slab = _pack_masks(src_mask, trg_mask, B, S, Se)

    kernel = functools.partial(decoder_layer_kernel, batch=B, s_q=S, s_kv=Se)
    out_x, out_attn = pl.pallas_call(
        kernel,
        out_shape=(jax.ShapeDtypeStruct((B * S, D_MODEL), jnp.float32),
                   jax.ShapeDtypeStruct((B * HEADS * S, Se), jnp.float32)),
    )(x.reshape(B * S, D),
      e_outputs.reshape(B * Se, D).astype(jnp.bfloat16),   # bf16 on the wire (MXU-only use)
      mask_slab, w_slab, p_slab)

    return out_x.reshape(B, S, D), out_attn.reshape(B, HEADS, S, Se)


# ---------------------------------------------------------------------------
# Pure-JAX f32 reference (mirrors the PyTorch module) for correctness check.
# ---------------------------------------------------------------------------
def decoder_layer_ref(x, e_outputs, src_mask, trg_mask, params):
    norm_p, a1w, a1b, a2w, a2b, ffw1, ffb1, ffw2, ffb2 = params

    def norm(t, i):
        alpha, bias = norm_p[i, 0], norm_p[i, 1]
        mean = jnp.mean(t, axis=-1, keepdims=True)
        c = t - mean
        var = jnp.sum(c * c, axis=-1, keepdims=True) / (t.shape[-1] - 1)
        return alpha * c / (jnp.sqrt(var) + EPS) + bias

    def mha(xq, xkv, w, b, mask):
        q = xq @ w[0] + b[0]
        k = xkv @ w[1] + b[1]
        v = xkv @ w[2] + b[2]
        Bb, Sq, _ = q.shape
        Sk = k.shape[1]
        q = q.reshape(Bb, Sq, HEADS, D_K).transpose(0, 2, 1, 3)
        k = k.reshape(Bb, Sk, HEADS, D_K).transpose(0, 2, 1, 3)
        v = v.reshape(Bb, Sk, HEADS, D_K).transpose(0, 2, 1, 3)
        scores = jnp.einsum('bhqd,bhkd->bhqk', q, k) / math.sqrt(D_K)
        scores = jnp.where(mask[:, None] == 0.0, NEG_INF, scores)
        attn = jax.nn.softmax(scores, axis=-1)
        ctx = jnp.einsum('bhqk,bhkd->bhqd', attn, v)
        ctx = ctx.transpose(0, 2, 1, 3).reshape(Bb, Sq, D_MODEL)
        return ctx @ w[3] + b[3], attn

    x2 = norm(x, 0)
    sa, _ = mha(x2, x2, a1w, a1b, trg_mask)
    x = x + sa
    x2 = norm(x, 1)
    ctx, attn = mha(x2, e_outputs, a2w, a2b, src_mask)
    x = x + ctx
    x2 = norm(x, 2)
    hidden = jnp.maximum(x2 @ ffw1 + ffb1, 0.0)
    x = x + hidden @ ffw2 + ffb2
    return x, attn


def init_params(key):
    ks = jax.random.split(key, 10)
    norm_alpha = 1.0 + 0.1 * jax.random.normal(ks[0], (3, D_MODEL), jnp.float32)
    norm_bias = 0.05 * jax.random.normal(ks[1], (3, D_MODEL), jnp.float32)
    norm_p = jnp.stack([norm_alpha, norm_bias], axis=1)          # (3, 2, D)
    a1w = 0.1 * jax.random.normal(ks[2], (4, D_MODEL, D_MODEL), jnp.float32)
    a1b = 0.01 * jax.random.normal(ks[3], (4, D_MODEL), jnp.float32)
    a2w = 0.1 * jax.random.normal(ks[4], (4, D_MODEL, D_MODEL), jnp.float32)
    a2b = 0.01 * jax.random.normal(ks[5], (4, D_MODEL), jnp.float32)
    ffw1 = 0.1 * jax.random.normal(ks[6], (D_MODEL, D_FF), jnp.float32)
    ffb1 = 0.01 * jax.random.normal(ks[7], (1, D_FF), jnp.float32)
    ffw2 = 0.05 * jax.random.normal(ks[8], (D_FF, D_MODEL), jnp.float32)
    ffb2 = 0.01 * jax.random.normal(ks[9], (1, D_MODEL), jnp.float32)
    return (norm_p, a1w, a1b, a2w, a2b, ffw1, ffb1, ffw2, ffb2)


if __name__ == "__main__":
    B, S, Se = 2, 8, 8
    key = jax.random.PRNGKey(0)
    kx, ke, kp = jax.random.split(key, 3)

    x = jax.random.normal(kx, (B, S, D_MODEL), jnp.float32)
    e_outputs = jax.random.normal(ke, (B, Se, D_MODEL), jnp.float32)

    # causal target mask; full source mask with one padded position in batch 1
    trg_mask = jnp.broadcast_to(jnp.tril(jnp.ones((S, S), jnp.float32)), (B, S, S))
    src_mask = jnp.ones((B, 1, Se), jnp.float32).at[1, 0, Se - 1].set(0.0)

    params = init_params(kp)

    out_x, out_attn = decoder_layer_pallas(x, e_outputs, src_mask, trg_mask, params)
    out_x = jax.block_until_ready(out_x)
    out_attn = jax.block_until_ready(out_attn)

    ref_x, ref_attn = decoder_layer_ref(x, e_outputs, src_mask, trg_mask, params)
    np.testing.assert_allclose(np.asarray(out_x), np.asarray(ref_x),
                               rtol=5e-2, atol=5e-2)
    np.testing.assert_allclose(np.asarray(out_attn), np.asarray(ref_attn),
                               rtol=5e-2, atol=5e-2)

    print("KERNEL_OK")
</pallas_src>

<mosaic_0001>
module attributes {stable_mosaic.version = 11 : i64} {
  func.func @decoder_layer_kernel(%arg0: memref<16x32xf32, #tpu.memory_space<vmem>>, %arg1: memref<16x32xbf16, #tpu.memory_space<vmem>>, %arg2: memref<18x8xf32, #tpu.memory_space<vmem>>, %arg3: memref<32x4736xbf16, #tpu.memory_space<vmem>>, %arg4: memref<3x2048xf32, #tpu.memory_space<vmem>>, %arg5: memref<16x32xf32, #tpu.memory_space<vmem>>, %arg6: memref<64x8xf32, #tpu.memory_space<vmem>>) attributes {dimension_semantics = [], scalar_prefetch = 0 : i64, scratch_operands = 0 : i64, tpu.core_type = #tpu.core_type<tc>} {
    %0 = tpu.iota {dimensions = array<i32: 0>} : vector<32x32xi32>
    %1 = arith.sitofp %0 : vector<32x32xi32> to vector<32x32xf32>
    %2 = tpu.iota {dimensions = array<i32: 1>} : vector<32x32xi32>
    %3 = arith.sitofp %2 : vector<32x32xi32> to vector<32x32xf32>
    %cst = arith.constant 1.250000e-01 : f32
    %4 = vector.broadcast %cst : f32 to vector<32x32xf32>
    %5 = arith.mulf %1, %4 : vector<32x32xf32>
    %6 = math.floor %5 : vector<32x32xf32>
    %cst_0 = arith.constant 1.250000e-01 : f32
    %7 = vector.broadcast %cst_0 : f32 to vector<32x32xf32>
    %8 = arith.mulf %3, %7 : vector<32x32xf32>
    %9 = math.floor %8 : vector<32x32xf32>
    %10 = arith.cmpf oeq, %6, %9 : vector<32x32xf32>
    %cst_1 = arith.constant 1.000000e+00 : f32
    %cst_2 = arith.constant 0.000000e+00 : f32
    %11 = vector.broadcast %cst_1 : f32 to vector<32x32xf32>
    %12 = vector.broadcast %cst_2 : f32 to vector<32x32xf32>
    %13 = arith.select %10, %11, %12 : vector<32x32xi1>, vector<32x32xf32>
    %cst_3 = arith.constant 0.353553385 : f32
    %14 = vector.broadcast %cst_3 : f32 to vector<32x32xf32>
    %15 = arith.mulf %13, %14 : vector<32x32xf32>
    %c0 = arith.constant 0 : index
    %c0_4 = arith.constant 0 : index
    %16 = vector.load %arg0[%c0, %c0_4] : memref<16x32xf32, #tpu.memory_space<vmem>>, vector<16x32xf32>
    %c2 = arith.constant 2 : index
    %c0_5 = arith.constant 0 : index
    %17 = vector.load %arg4[%c2, %c0_5] : memref<3x2048xf32, #tpu.memory_space<vmem>>, vector<1x32xf32>
    %c2_6 = arith.constant 2 : index
    %c128 = arith.constant 128 : index
    %18 = vector.load %arg4[%c2_6, %c128] : memref<3x2048xf32, #tpu.memory_space<vmem>>, vector<1x32xf32>
    %cst_7 = arith.constant dense<0.000000e+00> : vector<16xf32>
    %19 = vector.multi_reduction <add>, %16, %cst_7 [1] : vector<16x32xf32> to vector<16xf32>
    %20 = vector.shape_cast %19 : vector<16xf32> to vector<16x1xf32>
    %cst_8 = arith.constant 3.200000e+01 : f32
    %21 = vector.broadcast %cst_8 : f32 to vector<16x1xf32>
    %22 = arith.divf %20, %21 : vector<16x1xf32>
    %23 = vector.broadcast %22 : vector<16x1xf32> to vector<16x32xf32>
    %24 = arith.subf %16, %23 : vector<16x32xf32>
    %25 = arith.mulf %24, %24 : vector<16x32xf32>
    %cst_9 = arith.constant dense<0.000000e+00> : vector<16xf32>
    %26 = vector.multi_reduction <add>, %25, %cst_9 [1] : vector<16x32xf32> to vector<16xf32>
    %27 = vector.shape_cast %26 : vector<16xf32> to vector<16x1xf32>
    %cst_10 = arith.constant 0.0322580636 : f32
    %28 = vector.broadcast %cst_10 : f32 to vector<16x1xf32>
    %29 = arith.mulf %27, %28 : vector<16x1xf32>
    %30 = math.sqrt %29 : vector<16x1xf32>
    %cst_11 = arith.constant 9.99999997E-7 : f32
    %31 = vector.broadcast %cst_11 : f32 to vector<16x1xf32>
    %32 = arith.addf %30, %31 : vector<16x1xf32>
    %33 = tpu.reciprocal %32 : vector<16x1xf32> -> vector<16x1xf32>
    %34 = vector.broadcast %33 : vector<16x1xf32> to vector<16x32xf32>
    %35 = arith.mulf %24, %34 : vector<16x32xf32>
    %36 = vector.broadcast %17 : vector<1x32xf32> to vector<16x32xf32>
    %37 = arith.mulf %36, %35 : vector<16x32xf32>
    %38 = vector.broadcast %18 : vector<1x32xf32> to vector<16x32xf32>
    %39 = arith.addf %37, %38 : vector<16x32xf32>
    %c0_12 = arith.constant 0 : index
    %c0_13 = arith.constant 0 : index
    %40 = vector.load %arg3[%c0_12, %c0_13] : memref<32x4736xbf16, #tpu.memory_space<vmem>>, vector<32x96xbf16>
    %41 = arith.truncf %39 : vector<16x32xf32> to vector<16x32xbf16>
    %cst_14 = arith.constant dense<0.000000e+00> : vector<16x96xf32>
    %42 = tpu.matmul %41, %40, %cst_14 {dimension_numbers = #tpu.dot_dimension_numbers<[1], [0], [0], [1], [0, 0, 1, 1], [], []>} : vector<16x32xbf16>, vector<32x96xbf16>, vector<16x96xf32> -> vector<16x96xf32>
    %c1 = arith.constant 1 : index
    %c0_15 = arith.constant 0 : index
    %43 = vector.load %arg4[%c1, %c0_15] : memref<3x2048xf32, #tpu.memory_space<vmem>>, vector<1x96xf32>
    %44 = vector.broadcast %43 : vector<1x96xf32> to vector<16x96xf32>
    %45 = arith.addf %42, %44 : vector<16x96xf32>
    %46 = vector.extract_strided_slice %45 {offsets = [0, 0], sizes = [8, 32], strides = [1, 1]} : vector<16x96xf32> to vector<8x32xf32>
    %47 = vector.extract_strided_slice %45 {offsets = [0, 32], sizes = [8, 32], strides = [1, 1]} : vector<16x96xf32> to vector<8x32xf32>
    %48 = arith.truncf %47 : vector<8x32xf32> to vector<8x32xbf16>
    %49 = vector.extract_strided_slice %45 {offsets = [0, 64], sizes = [8, 32], strides = [1, 1]} : vector<16x96xf32> to vector<8x32xf32>
    %50 = arith.truncf %49 : vector<8x32xf32> to vector<8x32xbf16>
    %c0_16 = arith.constant 0 : index
    %c0_17 = arith.constant 0 : index
    %51 = vector.load %arg2[%c0_16, %c0_17] : memref<18x8xf32, #tpu.memory_space<vmem>>, vector<8x8xf32>
    %52 = tpu.concatenate %51, %51, %51, %51 in 0 : vector<8x8xf32>, vector<8x8xf32>, vector<8x8xf32>, vector<8x8xf32> -> vector<32x8xf32>
    %53 = tpu.concatenate %46, %46, %46, %46 in 0 : vector<8x32xf32>, vector<8x32xf32>, vector<8x32xf32>, vector<8x32xf32> -> vector<32x32xf32>
    %54 = arith.mulf %53, %15 : vector<32x32xf32>
    %55 = arith.truncf %54 : vector<32x32xf32> to vector<32x32xbf16>
    %cst_18 = arith.constant dense<0.000000e+00> : vector<32x8xf32>
    %56 = tpu.matmul %55, %48, %cst_18 {dimension_numbers = #tpu.dot_dimension_numbers<[1], [1], [0], [0], [0, 0, 1, 0], [], []>} : vector<32x32xbf16>, vector<8x32xbf16>, vector<32x8xf32> -> vector<32x8xf32>
    %57 = arith.addf %56, %52 : vector<32x8xf32>
    %cst_19 = arith.constant dense<0xFF800000> : vector<32xf32>
    %58 = vector.multi_reduction <maximumf>, %57, %cst_19 [1] : vector<32x8xf32> to vector<32xf32>
    %59 = vector.shape_cast %58 : vector<32xf32> to vector<32x1xf32>
    %60 = vector.broadcast %59 : vector<32x1xf32> to vector<32x8xf32>
    %61 = arith.subf %57, %60 : vector<32x8xf32>
    %62 = math.exp %61 : vector<32x8xf32>
    %cst_20 = arith.constant dense<0.000000e+00> : vector<32xf32>
    %63 = vector.multi_reduction <add>, %62, %cst_20 [1] : vector<32x8xf32> to vector<32xf32>
    %64 = vector.shape_cast %63 : vector<32xf32> to vector<32x1xf32>
    %65 = tpu.reciprocal %64 {approx = true} : vector<32x1xf32> -> vector<32x1xf32>
    %66 = vector.broadcast %65 : vector<32x1xf32> to vector<32x8xf32>
    %67 = arith.mulf %62, %66 : vector<32x8xf32>
    %68 = arith.truncf %67 : vector<32x8xf32> to vector<32x8xbf16>
    %cst_21 = arith.constant dense<0.000000e+00> : vector<32x32xf32>
    %69 = tpu.matmul %68, %50, %cst_21 {dimension_numbers = #tpu.dot_dimension_numbers<[1], [0], [0], [1], [0, 0, 1, 1], [], []>} : vector<32x8xbf16>, vector<8x32xbf16>, vector<32x32xf32> -> vector<32x32xf32>
    %70 = arith.mulf %69, %13 : vector<32x32xf32>
    %71 = vector.extract_strided_slice %70 {offsets = [0, 0], sizes = [8, 32], strides = [1, 1]} : vector<32x32xf32> to vector<8x32xf32>
    %72 = vector.extract_strided_slice %70 {offsets = [8, 0], sizes = [8, 32], strides = [1, 1]} : vector<32x32xf32> to vector<8x32xf32>
    %73 = arith.addf %71, %72 : vector<8x32xf32>
    %74 = vector.extract_strided_slice %70 {offsets = [16, 0], sizes = [8, 32], strides = [1, 1]} : vector<32x32xf32> to vector<8x32xf32>
    %75 = arith.addf %73, %74 : vector<8x32xf32>
    %76 = vector.extract_strided_slice %70 {offsets = [24, 0], sizes = [8, 32], strides = [1, 1]} : vector<32x32xf32> to vector<8x32xf32>
    %77 = arith.addf %75, %76 : vector<8x32xf32>
    %78 = vector.extract_strided_slice %45 {offsets = [8, 0], sizes = [8, 32], strides = [1, 1]} : vector<16x96xf32> to vector<8x32xf32>
    %79 = vector.extract_strided_slice %45 {offsets = [8, 32], sizes = [8, 32], strides = [1, 1]} : vector<16x96xf32> to vector<8x32xf32>
    %80 = arith.truncf %79 : vector<8x32xf32> to vector<8x32xbf16>
    %81 = vector.extract_strided_slice %45 {offsets = [8, 64], sizes = [8, 32], strides = [1, 1]} : vector<16x96xf32> to vector<8x32xf32>
    %82 = arith.truncf %81 : vector<8x32xf32> to vector<8x32xbf16>
    %c8 = arith.constant 8 : index
    %c0_22 = arith.constant 0 : index
    %83 = vector.load %arg2[%c8, %c0_22] : memref<18x8xf32, #tpu.memory_space<vmem>>, vector<8x8xf32>
    %84 = tpu.concatenate %83, %83, %83, %83 in 0 : vector<8x8xf32>, vector<8x8xf32>, vector<8x8xf32>, vector<8x8xf32> -> vector<32x8xf32>
    %85 = tpu.concatenate %78, %78, %78, %78 in 0 : vector<8x32xf32>, vector<8x32xf32>, vector<8x32xf32>, vector<8x32xf32> -> vector<32x32xf32>
    %86 = arith.mulf %85, %15 : vector<32x32xf32>
    %87 = arith.truncf %86 : vector<32x32xf32> to vector<32x32xbf16>
    %cst_23 = arith.constant dense<0.000000e+00> : vector<32x8xf32>
    %88 = tpu.matmul %87, %80, %cst_23 {dimension_numbers = #tpu.dot_dimension_numbers<[1], [1], [0], [0], [0, 0, 1, 0], [], []>} : vector<32x32xbf16>, vector<8x32xbf16>, vector<32x8xf32> -> vector<32x8xf32>
    %89 = arith.addf %88, %84 : vector<32x8xf32>
    %cst_24 = arith.constant dense<0xFF800000> : vector<32xf32>
    %90 = vector.multi_reduction <maximumf>, %89, %cst_24 [1] : vector<32x8xf32> to vector<32xf32>
    %91 = vector.shape_cast %90 : vector<32xf32> to vector<32x1xf32>
    %92 = vector.broadcast %91 : vector<32x1xf32> to vector<32x8xf32>
    %93 = arith.subf %89, %92 : vector<32x8xf32>
    %94 = math.exp %93 : vector<32x8xf32>
    %cst_25 = arith.constant dense<0.000000e+00> : vector<32xf32>
    %95 = vector.multi_reduction <add>, %94, %cst_25 [1] : vector<32x8xf32> to vector<32xf32>
    %96 = vector.shape_cast %95 : vector<32xf32> to vector<32x1xf32>
    %97 = tpu.reciprocal %96 {approx = true} : vector<32x1xf32> -> vector<32x1xf32>
    %98 = vector.broadcast %97 : vector<32x1xf32> to vector<32x8xf32>
    %99 = arith.mulf %94, %98 : vector<32x8xf32>
    %100 = arith.truncf %99 : vector<32x8xf32> to vector<32x8xbf16>
    %cst_26 = arith.constant dense<0.000000e+00> : vector<32x32xf32>
    %101 = tpu.matmul %100, %82, %cst_26 {dimension_numbers = #tpu.dot_dimension_numbers<[1], [0], [0], [1], [0, 0, 1, 1], [], []>} : vector<32x8xbf16>, vector<8x32xbf16>, vector<32x32xf32> -> vector<32x32xf32>
    %102 = arith.mulf %101, %13 : vector<32x32xf32>
    %103 = vector.extract_strided_slice %102 {offsets = [0, 0], sizes = [8, 32], strides = [1, 1]} : vector<32x32xf32> to vector<8x32xf32>
    %104 = vector.extract_strided_slice %102 {offsets = [8, 0], sizes = [8, 32], strides = [1, 1]} : vector<32x32xf32> to vector<8x32xf32>
    %105 = arith.addf %103, %104 : vector<8x32xf32>
    %106 = vector.extract_strided_slice %102 {offsets = [16, 0], sizes = [8, 32], strides = [1, 1]} : vector<32x32xf32> to vector<8x32xf32>
    %107 = arith.addf %105, %106 : vector<8x32xf32>
    %108 = vector.extract_strided_slice %102 {offsets = [24, 0], sizes = [8, 32], strides = [1, 1]} : vector<32x32xf32> to vector<8x32xf32>
    %109 = arith.addf %107, %108 : vector<8x32xf32>
    %110 = tpu.concatenate %77, %109 in 0 : vector<8x32xf32>, vector<8x32xf32> -> vector<16x32xf32>
    %c0_27 = arith.constant 0 : index
    %c128_28 = arith.constant 128 : index
    %111 = vector.load %arg3[%c0_27, %c128_28] : memref<32x4736xbf16, #tpu.memory_space<vmem>>, vector<32x32xbf16>
    %112 = arith.truncf %110 : vector<16x32xf32> to vector<16x32xbf16>
    %cst_29 = arith.constant dense<0.000000e+00> : vector<16x32xf32>
    %113 = tpu.matmul %112, %111, %cst_29 {dimension_numbers = #tpu.dot_dimension_numbers<[1], [0], [0], [1], [0, 0, 1, 1], [], []>} : vector<16x32xbf16>, vector<32x32xbf16>, vector<16x32xf32> -> vector<16x32xf32>
    %114 = arith.addf %16, %113 : vector<16x32xf32>
    %c1_30 = arith.constant 1 : index
    %c128_31 = arith.constant 128 : index
    %115 = vector.load %arg4[%c1_30, %c128_31] : memref<3x2048xf32, #tpu.memory_space<vmem>>, vector<1x32xf32>
    %116 = vector.broadcast %115 : vector<1x32xf32> to vector<16x32xf32>
    %117 = arith.addf %114, %116 : vector<16x32xf32>
    %c2_32 = arith.constant 2 : index
    %c256 = arith.constant 256 : index
    %118 = vector.load %arg4[%c2_32, %c256] : memref<3x2048xf32, #tpu.memory_space<vmem>>, vector<1x32xf32>
    %c2_33 = arith.constant 2 : index
    %c384 = arith.constant 384 : index
    %119 = vector.load %arg4[%c2_33, %c384] : memref<3x2048xf32, #tpu.memory_space<vmem>>, vector<1x32xf32>
    %cst_34 = arith.constant dense<0.000000e+00> : vector<16xf32>
    %120 = vector.multi_reduction <add>, %117, %cst_34 [1] : vector<16x32xf32> to vector<16xf32>
    %121 = vector.shape_cast %120 : vector<16xf32> to vector<16x1xf32>
    %cst_35 = arith.constant 3.200000e+01 : f32
    %122 = vector.broadcast %cst_35 : f32 to vector<16x1xf32>
    %123 = arith.divf %121, %122 : vector<16x1xf32>
    %124 = vector.broadcast %123 : vector<16x1xf32> to vector<16x32xf32>
    %125 = arith.subf %117, %124 : vector<16x32xf32>
    %126 = arith.mulf %125, %125 : vector<16x32xf32>
    %cst_36 = arith.constant dense<0.000000e+00> : vector<16xf32>
    %127 = vector.multi_reduction <add>, %126, %cst_36 [1] : vector<16x32xf32> to vector<16xf32>
    %128 = vector.shape_cast %127 : vector<16xf32> to vector<16x1xf32>
    %cst_37 = arith.constant 0.0322580636 : f32
    %129 = vector.broadcast %cst_37 : f32 to vector<16x1xf32>
    %130 = arith.mulf %128, %129 : vector<16x1xf32>
    %131 = math.sqrt %130 : vector<16x1xf32>
    %cst_38 = arith.constant 9.99999997E-7 : f32
    %132 = vector.broadcast %cst_38 : f32 to vector<16x1xf32>
    %133 = arith.addf %131, %132 : vector<16x1xf32>
    %134 = tpu.reciprocal %133 : vector<16x1xf32> -> vector<16x1xf32>
    %135 = vector.broadcast %134 : vector<16x1xf32> to vector<16x32xf32>
    %136 = arith.mulf %125, %135 : vector<16x32xf32>
    %137 = vector.broadcast %118 : vector<1x32xf32> to vector<16x32xf32>
    %138 = arith.mulf %137, %136 : vector<16x32xf32>
    %139 = vector.broadcast %119 : vector<1x32xf32> to vector<16x32xf32>
    %140 = arith.addf %138, %139 : vector<16x32xf32>
    %c0_39 = arith.constant 0 : index
    %c256_40 = arith.constant 256 : index
    %141 = vector.load %arg3[%c0_39, %c256_40] : memref<32x4736xbf16, #tpu.memory_space<vmem>>, vector<32x32xbf16>
    %142 = arith.truncf %140 : vector<16x32xf32> to vector<16x32xbf16>
    %cst_41 = arith.constant dense<0.000000e+00> : vector<16x32xf32>
    %143 = tpu.matmul %142, %141, %cst_41 {dimension_numbers = #tpu.dot_dimension_numbers<[1], [0], [0], [1], [0, 0, 1, 1], [], []>} : vector<16x32xbf16>, vector<32x32xbf16>, vector<16x32xf32> -> vector<16x32xf32>
    %c1_42 = arith.constant 1 : index
    %c256_43 = arith.constant 256 : index
    %144 = vector.load %arg4[%c1_42, %c256_43] : memref<3x2048xf32, #tpu.memory_space<vmem>>, vector<1x32xf32>
    %145 = vector.broadcast %144 : vector<1x32xf32> to vector<16x32xf32>
    %146 = arith.addf %143, %145 : vector<16x32xf32>
    %c0_44 = arith.constant 0 : index
    %c0_45 = arith.constant 0 : index
    %147 = vector.load %arg1[%c0_44, %c0_45] : memref<16x32xbf16, #tpu.memory_space<vmem>>, vector<16x32xbf16>
    %c0_46 = arith.constant 0 : index
    %c384_47 = arith.constant 384 : index
    %148 = vector.load %arg3[%c0_46, %c384_47] : memref<32x4736xbf16, #tpu.memory_space<vmem>>, vector<32x64xbf16>
    %cst_48 = arith.constant dense<0.000000e+00> : vector<16x64xf32>
    %149 = tpu.matmul %147, %148, %cst_48 {dimension_numbers = #tpu.dot_dimension_numbers<[1], [0], [0], [1], [0, 0, 1, 1], [], []>} : vector<16x32xbf16>, vector<32x64xbf16>, vector<16x64xf32> -> vector<16x64xf32>
    %c1_49 = arith.constant 1 : index
    %c384_50 = arith.constant 384 : index
    %150 = vector.load %arg4[%c1_49, %c384_50] : memref<3x2048xf32, #tpu.memory_space<vmem>>, vector<1x64xf32>
    %151 = vector.broadcast %150 : vector<1x64xf32> to vector<16x64xf32>
    %152 = arith.addf %149, %151 : vector<16x64xf32>
    %153 = vector.extract_strided_slice %146 {offsets = [0, 0], sizes = [8, 32], strides = [1, 1]} : vector<16x32xf32> to vector<8x32xf32>
    %154 = vector.extract_strided_slice %152 {offsets = [0, 0], sizes = [8, 32], strides = [1, 1]} : vector<16x64xf32> to vector<8x32xf32>
    %155 = arith.truncf %154 : vector<8x32xf32> to vector<8x32xbf16>
    %156 = vector.extract_strided_slice %152 {offsets = [0, 32], sizes = [8, 32], strides = [1, 1]} : vector<16x64xf32> to vector<8x32xf32>
    %157 = arith.truncf %156 : vector<8x32xf32> to vector<8x32xbf16>
    %c16 = arith.constant 16 : index
    %c0_51 = arith.constant 0 : index
    %158 = vector.load %arg2[%c16, %c0_51] : memref<18x8xf32, #tpu.memory_space<vmem>>, vector<1x8xf32>
    %159 = tpu.concatenate %153, %153, %153, %153 in 0 : vector<8x32xf32>, vector<8x32xf32>, vector<8x32xf32>, vector<8x32xf32> -> vector<32x32xf32>
    %160 = arith.mulf %159, %15 : vector<32x32xf32>
    %161 = arith.truncf %160 : vector<32x32xf32> to vector<32x32xbf16>
    %cst_52 = arith.constant dense<0.000000e+00> : vector<32x8xf32>
    %162 = tpu.matmul %161, %155, %cst_52 {dimension_numbers = #tpu.dot_dimension_numbers<[1], [1], [0], [0], [0, 0, 1, 0], [], []>} : vector<32x32xbf16>, vector<8x32xbf16>, vector<32x8xf32> -> vector<32x8xf32>
    %163 = vector.broadcast %158 : vector<1x8xf32> to vector<32x8xf32>
    %164 = arith.addf %162, %163 : vector<32x8xf32>
    %cst_53 = arith.constant dense<0xFF800000> : vector<32xf32>
    %165 = vector.multi_reduction <maximumf>, %164, %cst_53 [1] : vector<32x8xf32> to vector<32xf32>
    %166 = vector.shape_cast %165 : vector<32xf32> to vector<32x1xf32>
    %167 = vector.broadcast %166 : vector<32x1xf32> to vector<32x8xf32>
    %168 = arith.subf %164, %167 : vector<32x8xf32>
    %169 = math.exp %168 : vector<32x8xf32>
    %cst_54 = arith.constant dense<0.000000e+00> : vector<32xf32>
    %170 = vector.multi_reduction <add>, %169, %cst_54 [1] : vector<32x8xf32> to vector<32xf32>
    %171 = vector.shape_cast %170 : vector<32xf32> to vector<32x1xf32>
    %172 = tpu.reciprocal %171 {approx = true} : vector<32x1xf32> -> vector<32x1xf32>
    %173 = vector.broadcast %172 : vector<32x1xf32> to vector<32x8xf32>
    %174 = arith.mulf %169, %173 : vector<32x8xf32>
    %175 = arith.truncf %174 : vector<32x8xf32> to vector<32x8xbf16>
    %cst_55 = arith.constant dense<0.000000e+00> : vector<32x32xf32>
    %176 = tpu.matmul %175, %157, %cst_55 {dimension_numbers = #tpu.dot_dimension_numbers<[1], [0], [0], [1], [0, 0, 1, 1], [], []>} : vector<32x8xbf16>, vector<8x32xbf16>, vector<32x32xf32> -> vector<32x32xf32>
    %177 = arith.mulf %176, %13 : vector<32x32xf32>
    %178 = vector.extract_strided_slice %177 {offsets = [0, 0], sizes = [8, 32], strides = [1, 1]} : vector<32x32xf32> to vector<8x32xf32>
    %179 = vector.extract_strided_slice %177 {offsets = [8, 0], sizes = [8, 32], strides = [1, 1]} : vector<32x32xf32> to vector<8x32xf32>
    %180 = arith.addf %178, %179 : vector<8x32xf32>
    %181 = vector.extract_strided_slice %177 {offsets = [16, 0], sizes = [8, 32], strides = [1, 1]} : vector<32x32xf32> to vector<8x32xf32>
    %182 = arith.addf %180, %181 : vector<8x32xf32>
    %183 = vector.extract_strided_slice %177 {offsets = [24, 0], sizes = [8, 32], strides = [1, 1]} : vector<32x32xf32> to vector<8x32xf32>
    %184 = arith.addf %182, %183 : vector<8x32xf32>
    %c0_56 = arith.constant 0 : index
    %c0_57 = arith.constant 0 : index
    %185 = vector.load %arg6[%c0_56, %c0_57] : memref<64x8xf32, #tpu.memory_space<vmem>>, vector<32x8xf32>
    tpu.vector_store %arg6[%c0_56, %c0_57], %174 {strides = array<i32>} : memref<64x8xf32, #tpu.memory_space<vmem>>, vector<32x8xf32>,
    %186 = vector.extract_strided_slice %146 {offsets = [8, 0], sizes = [8, 32], strides = [1, 1]} : vector<16x32xf32> to vector<8x32xf32>
    %187 = vector.extract_strided_slice %152 {offsets = [8, 0], sizes = [8, 32], strides = [1, 1]} : vector<16x64xf32> to vector<8x32xf32>
    %188 = arith.truncf %187 : vector<8x32xf32> to vector<8x32xbf16>
    %189 = vector.extract_strided_slice %152 {offsets = [8, 32], sizes = [8, 32], strides = [1, 1]} : vector<16x64xf32> to vector<8x32xf32>
    %190 = arith.truncf %189 : vector<8x32xf32> to vector<8x32xbf16>
    %c17 = arith.constant 17 : index
    %c0_58 = arith.constant 0 : index
    %191 = vector.load %arg2[%c17, %c0_58] : memref<18x8xf32, #tpu.memory_space<vmem>>, vector<1x8xf32>
    %192 = tpu.concatenate %186, %186, %186, %186 in 0 : vector<8x32xf32>, vector<8x32xf32>, vector<8x32xf32>, vector<8x32xf32> -> vector<32x32xf32>
    %193 = arith.mulf %192, %15 : vector<32x32xf32>
    %194 = arith.truncf %193 : vector<32x32xf32> to vector<32x32xbf16>
    %cst_59 = arith.constant dense<0.000000e+00> : vector<32x8xf32>
    %195 = tpu.matmul %194, %188, %cst_59 {dimension_numbers = #tpu.dot_dimension_numbers<[1], [1], [0], [0], [0, 0, 1, 0], [], []>} : vector<32x32xbf16>, vector<8x32xbf16>, vector<32x8xf32> -> vector<32x8xf32>
    %196 = vector.broadcast %191 : vector<1x8xf32> to vector<32x8xf32>
    %197 = arith.addf %195, %196 : vector<32x8xf32>
    %cst_60 = arith.constant dense<0xFF800000> : vector<32xf32>
    %198 = vector.multi_reduction <maximumf>, %197, %cst_60 [1] : vector<32x8xf32> to vector<32xf32>
    %199 = vector.shape_cast %198 : vector<32xf32> to vector<32x1xf32>
    %200 = vector.broadcast %199 : vector<32x1xf32> to vector<32x8xf32>
    %201 = arith.subf %197, %200 : vector<32x8xf32>
    %202 = math.exp %201 : vector<32x8xf32>
    %cst_61 = arith.constant dense<0.000000e+00> : vector<32xf32>
    %203 = vector.multi_reduction <add>, %202, %cst_61 [1] : vector<32x8xf32> to vector<32xf32>
    %204 = vector.shape_cast %203 : vector<32xf32> to vector<32x1xf32>
    %205 = tpu.reciprocal %204 {approx = true} : vector<32x1xf32> -> vector<32x1xf32>
    %206 = vector.broadcast %205 : vector<32x1xf32> to vector<32x8xf32>
    %207 = arith.mulf %202, %206 : vector<32x8xf32>
    %208 = arith.truncf %207 : vector<32x8xf32> to vector<32x8xbf16>
    %cst_62 = arith.constant dense<0.000000e+00> : vector<32x32xf32>
    %209 = tpu.matmul %208, %190, %cst_62 {dimension_numbers = #tpu.dot_dimension_numbers<[1], [0], [0], [1], [0, 0, 1, 1], [], []>} : vector<32x8xbf16>, vector<8x32xbf16>, vector<32x32xf32> -> vector<32x32xf32>
    %210 = arith.mulf %209, %13 : vector<32x32xf32>
    %211 = vector.extract_strided_slice %210 {offsets = [0, 0], sizes = [8, 32], strides = [1, 1]} : vector<32x32xf32> to vector<8x32xf32>
    %212 = vector.extract_strided_slice %210 {offsets = [8, 0], sizes = [8, 32], strides = [1, 1]} : vector<32x32xf32> to vector<8x32xf32>
    %213 = arith.addf %211, %212 : vector<8x32xf32>
    %214 = vector.extract_strided_slice %210 {offsets = [16, 0], sizes = [8, 32], strides = [1, 1]} : vector<32x32xf32> to vector<8x32xf32>
    %215 = arith.addf %213, %214 : vector<8x32xf32>
    %216 = vector.extract_strided_slice %210 {offsets = [24, 0], sizes = [8, 32], strides = [1, 1]} : vector<32x32xf32> to vector<8x32xf32>
    %217 = arith.addf %215, %216 : vector<8x32xf32>
    %c32 = arith.constant 32 : index
    %c0_63 = arith.constant 0 : index
    %218 = vector.load %arg6[%c32, %c0_63] : memref<64x8xf32, #tpu.memory_space<vmem>>, vector<32x8xf32>
    tpu.vector_store %arg6[%c32, %c0_63], %207 {strides = array<i32>} : memref<64x8xf32, #tpu.memory_space<vmem>>, vector<32x8xf32>,
    %219 = tpu.concatenate %184, %217 in 0 : vector<8x32xf32>, vector<8x32xf32> -> vector<16x32xf32>
    %c0_64 = arith.constant 0 : index
    %c512 = arith.constant 512 : index
    %220 = vector.load %arg3[%c0_64, %c512] : memref<32x4736xbf16, #tpu.memory_space<vmem>>, vector<32x32xbf16>
    %221 = arith.truncf %219 : vector<16x32xf32> to vector<16x32xbf16>
    %cst_65 = arith.constant dense<0.000000e+00> : vector<16x32xf32>
    %222 = tpu.matmul %221, %220, %cst_65 {dimension_numbers = #tpu.dot_dimension_numbers<[1], [0], [0], [1], [0, 0, 1, 1], [], []>} : vector<16x32xbf16>, vector<32x32xbf16>, vector<16x32xf32> -> vector<16x32xf32>
    %223 = arith.addf %117, %222 : vector<16x32xf32>
    %c1_66 = arith.constant 1 : index
    %c512_67 = arith.constant 512 : index
    %224 = vector.load %arg4[%c1_66, %c512_67] : memref<3x2048xf32, #tpu.memory_space<vmem>>, vector<1x32xf32>
    %225 = vector.broadcast %224 : vector<1x32xf32> to vector<16x32xf32>
    %226 = arith.addf %223, %225 : vector<16x32xf32>
    %c2_68 = arith.constant 2 : index
    %c512_69 = arith.constant 512 : index
    %227 = vector.load %arg4[%c2_68, %c512_69] : memref<3x2048xf32, #tpu.memory_space<vmem>>, vector<1x32xf32>
    %c2_70 = arith.constant 2 : index
    %c640 = arith.constant 640 : index
    %228 = vector.load %arg4[%c2_70, %c640] : memref<3x2048xf32, #tpu.memory_space<vmem>>, vector<1x32xf32>
    %cst_71 = arith.constant dense<0.000000e+00> : vector<16xf32>
    %229 = vector.multi_reduction <add>, %226, %cst_71 [1] : vector<16x32xf32> to vector<16xf32>
    %230 = vector.shape_cast %229 : vector<16xf32> to vector<16x1xf32>
    %cst_72 = arith.constant 3.200000e+01 : f32
    %231 = vector.broadcast %cst_72 : f32 to vector<16x1xf32>
    %232 = arith.divf %230, %231 : vector<16x1xf32>
    %233 = vector.broadcast %232 : vector<16x1xf32> to vector<16x32xf32>
    %234 = arith.subf %226, %233 : vector<16x32xf32>
    %235 = arith.mulf %234, %234 : vector<16x32xf32>
    %cst_73 = arith.constant dense<0.000000e+00> : vector<16xf32>
    %236 = vector.multi_reduction <add>, %235, %cst_73 [1] : vector<16x32xf32> to vector<16xf32>
    %237 = vector.shape_cast %236 : vector<16xf32> to vector<16x1xf32>
    %cst_74 = arith.constant 0.0322580636 : f32
    %238 = vector.broadcast %cst_74 : f32 to vector<16x1xf32>
    %239 = arith.mulf %237, %238 : vector<16x1xf32>
    %240 = math.sqrt %239 : vector<16x1xf32>
    %cst_75 = arith.constant 9.99999997E-7 : f32
    %241 = vector.broadcast %cst_75 : f32 to vector<16x1xf32>
    %242 = arith.addf %240, %241 : vector<16x1xf32>
    %243 = tpu.reciprocal %242 : vector<16x1xf32> -> vector<16x1xf32>
    %244 = vector.broadcast %243 : vector<16x1xf32> to vector<16x32xf32>
    %245 = arith.mulf %234, %244 : vector<16x32xf32>
    %246 = vector.broadcast %227 : vector<1x32xf32> to vector<16x32xf32>
    %247 = arith.mulf %246, %245 : vector<16x32xf32>
    %248 = vector.broadcast %228 : vector<1x32xf32> to vector<16x32xf32>
    %249 = arith.addf %247, %248 : vector<16x32xf32>
    %c0_76 = arith.constant 0 : index
    %c640_77 = arith.constant 640 : index
    %250 = vector.load %arg3[%c0_76, %c640_77] : memref<32x4736xbf16, #tpu.memory_space<vmem>>, vector<32x2048xbf16>
    %251 = arith.truncf %249 : vector<16x32xf32> to vector<16x32xbf16>
    %cst_78 = arith.constant dense<0.000000e+00> : vector<16x2048xf32>
    %252 = tpu.matmul %251, %250, %cst_78 {dimension_numbers = #tpu.dot_dimension_numbers<[1], [0], [0], [1], [0, 0, 1, 1], [], []>} : vector<16x32xbf16>, vector<32x2048xbf16>, vector<16x2048xf32> -> vector<16x2048xf32>
    %c0_79 = arith.constant 0 : index
    %c0_80 = arith.constant 0 : index
    %253 = vector.load %arg4[%c0_79, %c0_80] : memref<3x2048xf32, #tpu.memory_space<vmem>>, vector<1x2048xf32>
    %254 = vector.broadcast %253 : vector<1x2048xf32> to vector<16x2048xf32>
    %255 = arith.addf %252, %254 : vector<16x2048xf32>
    %cst_81 = arith.constant 0.000000e+00 : f32
    %256 = vector.broadcast %cst_81 : f32 to vector<16x2048xf32>
    %257 = arith.maximumf %255, %256 : vector<16x2048xf32>
    %258 = arith.truncf %257 : vector<16x2048xf32> to vector<16x2048xbf16>
    %c0_82 = arith.constant 0 : index
    %c2688 = arith.constant 2688 : index
    %259 = vector.load %arg3[%c0_82, %c2688] : memref<32x4736xbf16, #tpu.memory_space<vmem>>, vector<32x2048xbf16>
    %cst_83 = arith.constant dense<0.000000e+00> : vector<16x32xf32>
    %260 = tpu.matmul %258, %259, %cst_83 {dimension_numbers = #tpu.dot_dimension_numbers<[1], [1], [0], [0], [0, 0, 1, 0], [], []>} : vector<16x2048xbf16>, vector<32x2048xbf16>, vector<16x32xf32> -> vector<16x32xf32>
    %261 = arith.addf %226, %260 : vector<16x32xf32>
    %c1_84 = arith.constant 1 : index
    %c640_85 = arith.constant 640 : index
    %262 = vector.load %arg4[%c1_84, %c640_85] : memref<3x2048xf32, #tpu.memory_space<vmem>>, vector<1x32xf32>
    %263 = vector.broadcast %262 : vector<1x32xf32> to vector<16x32xf32>
    %264 = arith.addf %261, %263 : vector<16x32xf32>
    %c0_86 = arith.constant 0 : index
    %c0_87 = arith.constant 0 : index
    %265 = vector.load %arg5[%c0_86, %c0_87] : memref<16x32xf32, #tpu.memory_space<vmem>>, vector<16x32xf32>
    tpu.vector_store %arg5[%c0_86, %c0_87], %264 {strides = array<i32>} : memref<16x32xf32, #tpu.memory_space<vmem>>, vector<16x32xf32>,
    return
  }
}

</mosaic_0001>

<bundles_post_ra>
// kernel: tpu_custom_call.1
= control target key start
LH: loop header
LB: loop body
LE: loop exit
PB: predicated region body
PF: predicated region fallthrough
CT: control target
= control target key end

     0   :  { %12 = vsyncpa [#allocation3], 0  ;;  %s2999_s0 = inlined_call_operand.vmem [shape: f32[16,32], index: 0, kind: input, shape index: {}]   ;;  %s3000_s1 = inlined_call_operand.vmem [shape: bf16[16,32], index: 1, kind: input, shape index: {}]   ;;  %s3001_s2 = inlined_call_operand.vmem [shape: f32[18,8], index: 2, kind: input, shape index: {}]   ;;  %s3002_s3 = inlined_call_operand.hbm [shape: bf16[32,4736], index: 3, kind: input, shape index: {}]   ;;  %s3003_s4 = inlined_call_operand.hbm [shape: f32[3,2048], index: 4, kind: input, shape index: {}]   ;;  %s3004_s5 = inlined_call_operand.hbm [shape: f32[16,32], index: 5, kind: output, shape index: {0}]   ;;  %s3005_s6 = inlined_call_operand.vmem [shape: f32[64,8], index: 6, kind: output, shape index: {1}]  }
   0x1   :  { %13 = vsyncpa [#allocation6], 0 }
   0x2   :  { %14 = vsyncpa [#allocation4], 0  ;;  %s25_s23 = sshll.u32 %s3002_s3, 4  ;;  %s2598_s24 = smov [#allocation2]   ;;  %s26_s23 = int_to_ptr.hbm [resolvable:$true] %s25_s23 }
   0x3   :  { %s27_s25 = sshll.u32 %s2598_s24, 4  ;;  %s39_s28 = sshll.u32 %s3003_s4, 4  ;;  %s28_s25 = int_to_ptr.vmem [resolvable:$true] %s27_s25  ;;  %s40_s28 = int_to_ptr.hbm [resolvable:$true] %s39_s28 }
   0x4   :  { %s2599_s29 = smov 2368   ;;  %s2600_s30 = smov 148  }
   0x5   :  { %33 = dma.hbm_to_vmem [thread:$0]  %s26_s23, 9472, %s28_s25, [#allocation3], %s2599_s29, %s2599_s29, %s2600_s30  }
   0x6   :  { %s2601_s7 = smov [#allocation5]  }
   0x7   :  { %s41_s8 = sshll.u32 %s2601_s7, 4  ;;  %s42_s8 = int_to_ptr.vmem [resolvable:$true] %s41_s8 }
   0x8   :  { %44 = dma.hbm_to_vmem [thread:$0]  %s40_s28, 1024, %s42_s8, [#allocation6]  }
   0x9   :  { %2592 = dma.done.wait [#allocation3], 9472  }
   0xa   :  { %2593 = vsyncadd [#allocation3], 4294957824 }
   0xb   :  { %2594 = dma.done.wait [#allocation6], 1024  }
   0xc   :  { %2595 = vsyncadd [#allocation6], 4294966272  ;;  %vm92_vm0 = vcmask 261120   ;;  %v2653_v0 = vld [vmem:[%s2999_s0] sm:$0xff]  ;;  %v2660_v2 = vld [vmem:[%s2999_s0 + $0x8] sm:$0xff]  ;;  %v2602_v4 = vmov 32.0  }
   0xd   :  { %v93_v1 = vsel %vm92_vm0, %v2653_v0, 0.0  ;;  %v96_v3 = vsel %vm92_vm0, %v2660_v2, 0.0  ;;  %2430 = vrcp.f32 %v2602_v4  ;;  %v1999_v21 = vld [vmem:[#allocation2 + $0x128] sm:$0xf]  ;;  %v2331_v22 = vld [vmem:[#allocation2 + $0x1b8] sm:$0xf0] }
   0xe   :  { %94 = vadd.xlane.f32.xlu0 %v93_v1  ;;  %v1995_v23 = vld [vmem:[#allocation2] sm:$0xf]  ;;  %v2000_v24 = vor.u32 %v2331_v22, %v1999_v21  ;;  %v2330_v25 = vld [vmem:[#allocation2 + $0x90] sm:$0xf0]  ;;  %s2603_s0 = smov 96   ;;  %s2605_s15 = smov 64  }
   0xf   :  { %v1996_v28 = vor.u32 %v2330_v25, %v1995_v23  ;;  %v2418_v23 = vld [vmem:[#allocation5 + $0x1] ss:$0 sm:$0xff]  ;;  %s1975_s12 = sshll.u32 %s3004_s5, 4  ;;  %s2607_s13 = smov 128   ;;  %s1976_s12 = int_to_ptr.hbm [resolvable:$true] %s1975_s12 }
  0x10   :  { %210 = vmatpush.bf16.msra.mxu0 %v2000_v24  ;;  %s2608_s14 = smov 8  }
  0x13   :  { %v2431_v5 = vpop.eup %2430 }
  0x14   :  { %v100_v6 = vmul.f32 32.0, %v2431_v5  ;;  %vm104_vm1 = vweird.f32 %v2431_v5  ;;  %211 = vmatpush.bf16.msra.mxu0 %v1996_v28  ;;  %v54_v28 = vlaneseq }
  0x16   :  { %97 = vadd.xlane.f32.xlu0 %v96_v3  ;;  %v101_v7 = vsub.f32 1.0, %v100_v6 }
  0x18   :  { %v102_v8 = vmul.f32 %v2431_v5, %v101_v7 }
  0x1a   :  { %v103_v9 = vadd.f32 %v2431_v5, %v102_v8 }
  0x1c   :  { %v2664_v10 = vsel %vm104_vm1, %v2431_v5, %v103_v9  ;;  %v2416_v9 = vld [vmem:[#allocation5 + $0x2] ss:$0 sm:$0xff] }
  0x81   :  { %v95_v11 = vpop.xlane.xlu0 %94 }
  0x82   :  { %v106_v12 = vmul.f32 %v2664_v10, %v95_v11 }
  0x84   :  { %v2668_v13 = vsub.f32 %v2653_v0, %v106_v12 }
  0x86   :  { %v110_v14 = vmul.f32 %v2668_v13, %v2668_v13 }
  0x88   :  { %v112_v15 = vsel %vm92_vm0, %v110_v14, 0.0 }
  0x89   :  { %113 = vadd.xlane.f32.xlu1 %v112_v15  ;;  %v98_v16 = vpop.xlane.xlu0 %97 }
  0x8a   :  { %v107_v17 = vmul.f32 %v2664_v10, %v98_v16 }
  0x8c   :  { %v2675_v18 = vsub.f32 %v2660_v2, %v107_v17  ;;  %v2417_v17 = vld [vmem:[#allocation5 + $0x6] ss:$0 sm:$0xff] }
  0x8e   :  { %v111_v19 = vmul.f32 %v2675_v18, %v2675_v18 }
  0x90   :  { %v115_v20 = vsel %vm92_vm0, %v111_v19, 0.0 }
  0x91   :  { %116 = vadd.xlane.f32.xlu1 %v115_v20 }
  0xfc   :  { %v114_v26 = vpop.xlane.xlu1 %113 }
  0xfd   :  { %v118_v27 = vmul.f32 0.032258064, %v114_v26 }
  0xff   :  { %2432 = vrsqrt.f32 %v118_v27  ;;  %vm127_vm2 = vcmp.eq.f32.partialorder %v118_v27, inf  ;;  %v130_v41 = vand.u32 2147483648, %v118_v27  ;;  %vm129_vm3 = vcmp.eq.f32.partialorder %v118_v27, 0.0 }
 0x104   :  { %v117_v29 = vpop.xlane.xlu1 %116 }
 0x105   :  { %v2433_v30 = vpop.eup %2432  ;;  %v119_v31 = vmul.f32 0.032258064, %v117_v29  ;;  %v55_v29 = vshrl.u32 %v54_v28, 7 }
 0x106   :  { %v121_v32 = vmul.f32 %v2433_v30, %v118_v27 }
 0x107   :  { %2434 = vrsqrt.f32 %v119_v31  ;;  %vm139_vm4 = vcmp.eq.f32.partialorder %v119_v31, inf  ;;  %v142_v49 = vand.u32 2147483648, %v119_v31  ;;  %vm141_vm5 = vcmp.eq.f32.partialorder %v119_v31, 0.0 }
 0x108   :  { %v122_v33 = vmul.f32 %v2433_v30, %v121_v32  ;;  %v59_v32 = vcvt.s32.f32 %v55_v29 }
 0x10a   :  { %v123_v34 = vmul.f32 0.5, %v122_v33 }
 0x10c   :  { %v124_v35 = vsub.f32 1.5, %v123_v34 }
 0x10d   :  { %v2435_v36 = vpop.eup %2434 }
 0x10e   :  { %v125_v37 = vmul.f32 %v2433_v30, %v124_v35  ;;  %v133_v38 = vmul.f32 %v2435_v36, %v119_v31  ;;  %v56_v30 = vadd.s32 8, %v55_v29  ;;  %v66_v35 = vmul.f32 0.125, %v59_v32 }
 0x110   :  { %v126_v39 = vmul.f32 %v125_v37, %v118_v27  ;;  %v134_v40 = vmul.f32 %v2435_v36, %v133_v38  ;;  %v60_v33 = vcvt.s32.f32 %v56_v30  ;;  %v70_v38 = vfloor.f32 %v66_v35 }
 0x112   :  { %v128_v42 = vsel %vm127_vm2, %v118_v27, %v126_v39  ;;  %v135_v43 = vmul.f32 0.5, %v134_v40 }
 0x113   :  { %v131_v44 = vsel %vm129_vm3, %v130_v41, %v128_v42  ;;  %v57_v41 = vadd.s32 16, %v55_v29  ;;  %v58_v42 = vadd.s32 24, %v55_v29  ;;  %vm257_vm3 = vcmask 64512  }
 0x114   :  { %v136_v45 = vsub.f32 1.5, %v135_v43  ;;  %v144_v46 = vadd.f32 1e-06, %v131_v44  ;;  %v2604_v43 = vmov 0.0  }
 0x116   :  { %v137_v47 = vmul.f32 %v2435_v36, %v136_v45  ;;  %2436 = vrcp.f32 %v144_v46  ;;  %v157_v57 = vand.u32 2147483648, %v144_v46  ;;  %vm151_vm7 = vweird.f32 %v144_v46 }
 0x117   :  { %v155_v59 = vand.u32 2147483647, %v144_v46  ;;  %v67_v36 = vmul.f32 0.125, %v60_v33 }
 0x118   :  { %v138_v48 = vmul.f32 %v137_v47, %v119_v31  ;;  %v158_v63 = vor.u32 1.1754944e-38, %v157_v57  ;;  %v62_v47 = vcvt.s32.f32 %v58_v42 }
 0x119   :  { %vm156_vm9 = vcmp.eq.f32.partialorder %v155_v59, 8.507059e+37  ;;  %v71_v39 = vfloor.f32 %v67_v36 }
 0x11a   :  { %v140_v50 = vsel %vm139_vm4, %v119_v31, %v138_v48  ;;  %v64_v31 = vand.u32 127, %v54_v28  ;;  %vm312_vm4 = vcmask 1043456  }
 0x11b   :  { %v143_v51 = vsel %vm141_vm5, %v142_v49, %v140_v50 }
 0x11c   :  { %v2437_v52 = vpop.eup %2436  ;;  %v145_v53 = vadd.f32 1e-06, %v143_v51  ;;  %v65_v34 = vcvt.s32.f32 %v64_v31 }
 0x11d   :  { %v147_v54 = vmul.f32 %v2437_v52, %v144_v46  ;;  %vm152_vm6 = vweird.f32 %v2437_v52  ;;  %v61_v46 = vcvt.s32.f32 %v57_v41 }
 0x11e   :  { %2438 = vrcp.f32 %v145_v53  ;;  %vm153_vm8 = vmor %vm151_vm7, %vm152_vm6  ;;  %v171_v4 = vand.u32 2147483648, %v145_v53  ;;  %v169_v6 = vand.u32 2147483647, %v145_v53  ;;  %vm165_vm11 = vweird.f32 %v145_v53 }
 0x11f   :  { %v148_v55 = vsub.f32 1.0, %v147_v54  ;;  %v74_v37 = vmul.f32 0.125, %v65_v34 }
 0x120   :  { %v172_v11 = vor.u32 1.1754944e-38, %v171_v4  ;;  %vm170_vm13 = vcmp.eq.f32.partialorder %v169_v6, 8.507059e+37 }
 0x121   :  { %v149_v56 = vmul.f32 %v2437_v52, %v148_v55  ;;  %v75_v40 = vfloor.f32 %v74_v37 }
 0x123   :  { %v150_v58 = vadd.f32 %v2437_v52, %v149_v56  ;;  %vm76_vm14 = vcmp.eq.f32.partialorder %v70_v38, %v75_v40  ;;  %vm77_vm15 = vcmp.eq.f32.partialorder %v71_v39, %v75_v40 }
 0x124   :  { %v2439_v60 = vpop.eup %2438  ;;  %v2691_v44 = vsel %vm76_vm14, 1.0, %v2604_v43  ;;  %v2693_v45 = vsel %vm77_vm15, 1.0, %v2604_v43 }
 0x125   :  { %v154_v61 = vsel %vm153_vm8, %v2437_v52, %v150_v58  ;;  %v161_v62 = vmul.f32 %v2439_v60, %v145_v53  ;;  %vm166_vm10 = vweird.f32 %v2439_v60  ;;  %v2696_v48 = vmul.f32 0.35355338, %v2691_v44 }
 0x126   :  { %v159_v3 = vsel %vm156_vm9, %v158_v63, %v154_v61  ;;  %vm167_vm12 = vmor %vm165_vm11, %vm166_vm10  ;;  %v2699_v49 = vmul.f32 0.35355338, %v2693_v45  ;;  %v68_v52 = vmul.f32 0.125, %v61_v46  ;;  %v69_v53 = vmul.f32 0.125, %v62_v47 }
 0x127   :  { %v162_v1 = vsub.f32 1.0, %v161_v62  ;;  %v174_v8 = vmul.f32 %v159_v3, %v2668_v13 }
 0x128   :  { %v72_v56 = vfloor.f32 %v68_v52  ;;  %v73_v57 = vfloor.f32 %v69_v53 }
 0x129   :  { %v163_v5 = vmul.f32 %v2439_v60, %v162_v1  ;;  %v177_v16 = vmul.f32 %v2416_v9, %v174_v8 }
 0x12a   :  { %vm78_vm1 = vcmp.eq.f32.partialorder %v72_v56, %v75_v40  ;;  %vm79_vm2 = vcmp.eq.f32.partialorder %v73_v57, %v75_v40 }
 0x12b   :  { %v164_v7 = vadd.f32 %v2439_v60, %v163_v5  ;;  %v180_v20 = vadd.f32 %v2417_v17, %v177_v16  ;;  %v2708_v63 = vsel %vm78_vm1, 1.0, %v2604_v43  ;;  %v2710_v1 = vsel %vm79_vm2, 1.0, %v2604_v43 }
 0x12c   :  { %v2713_v4 = vmul.f32 0.35355338, %v2708_v63  ;;  %v2716_v5 = vmul.f32 0.35355338, %v2710_v1 }
 0x12d   :  { %v168_v12 = vsel %vm167_vm12, %v2439_v60, %v164_v7 }
 0x12e   :  { %v173_v14 = vsel %vm170_vm13, %v172_v11, %v168_v12 }
 0x12f   :  { %v175_v15 = vmul.f32 %v173_v14, %v2675_v18  ;;  %v219_v14 = vld [vmem:[%s3001_s2] sm:$0xff] }
 0x131   :  { %v178_v19 = vmul.f32 %v2416_v9, %v175_v15 }
 0x133   :  { %v181_v21 = vadd.f32 %v2417_v17, %v178_v19 }
 0x135   :  { %v186_v22 = vpack.c.bf16 %v181_v21, %v180_v20 }
 0x137   :  { %2001 = vmatmul.msk.bf16.vlgmr.msra.gmra.mxu0 %vm92_vm0, %v186_v22  ;;  %v343_v22 = vld [vmem:[%s3001_s2 + $0x8] sm:$0xff] }
 0x1b4   :  { %v213_v24 = vpop.f32.mrf.mxu0 }
 0x1b5   :  { %v214_v25 = vadd.f32 %v2418_v23, %v213_v24 }
 0x1b7   :  { %v2683_v13 = vpack.c.bf16 %v214_v25, %v214_v25  ;;  %v220_v54 = vmul.f32 %v214_v25, %v2696_v48  ;;  %v221_v55 = vmul.f32 %v214_v25, %v2699_v49  ;;  %v222_v6 = vmul.f32 %v214_v25, %v2713_v4 }
 0x1b8   :  { %v223_v7 = vmul.f32 %v214_v25, %v2716_v5 }
 0x1b9   :  { %227 = vrot.lane.b32.xlu2 %v2683_v13, %s2603_s0  ;;  %v224_v58 = vpack.c.bf16 %v221_v55, %v220_v54 }
 0x1ba   :  { %v225_v8 = vpack.c.bf16 %v223_v7, %v222_v6 }
 0x1bc   :  { %v215_v26 = vpop.f32.mrf.mxu0 }
 0x1bd   :  { %v216_v27 = vadd.f32 %v2418_v23, %v215_v26 }
 0x1bf   :  { %v2687_v18 = vpack.c.bf16 %v216_v27, %v216_v27  ;;  %v344_v61 = vmul.f32 %v216_v27, %v2696_v48  ;;  %v345_v62 = vmul.f32 %v216_v27, %v2699_v49  ;;  %v346_v9 = vmul.f32 %v216_v27, %v2713_v4 }
 0x1c0   :  { %v347_v11 = vmul.f32 %v216_v27, %v2716_v5 }
 0x1c1   :  { %351 = vrot.lane.b32.xlu2 %v2687_v18, %s2603_s0  ;;  %v348_v3 = vpack.c.bf16 %v345_v62, %v344_v61 }
 0x1c2   :  { %v349_v12 = vpack.c.bf16 %v347_v11, %v346_v9 }
 0x213   :  { %v228_v50 = vpop.permute.xlu2 %227 }
 0x214   :  { %v236_v51 = vsel %vm92_vm0, %v228_v50, 0 }
 0x215   :  { %245 = vmatpush.bf16.xpose.msra.mxu1 %v236_v51 }
 0x21b   :  { %v352_v59 = vpop.permute.xlu2 %351 }
 0x21c   :  { %2002 = vmatmul.msk.bf16.vlgmr.msra.gmra.mxu1 %vm92_vm0, %v224_v58  ;;  %v360_v60 = vsel %vm92_vm0, %v352_v59, 0 }
 0x21d   :  { %369 = vmatpush.bf16.xpose.msra.mxu3 %v360_v60 }
 0x224   :  { %2006 = vmatmul.msk.bf16.vlgmr.msra.gmra.mxu3 %vm92_vm0, %v348_v3 }
 0x22c   :  { %2003 = vmatmul.msk.bf16.gmra.mxu1 %vm92_vm0, %v225_v8 }
 0x234   :  { %2007 = vmatmul.msk.bf16.gmra.mxu3 %vm92_vm0, %v349_v12 }
 0x299   :  { %v247_v15 = vpop.f32.mrf.mxu1 }
 0x29a   :  { %v248_v16 = vadd.f32 %v247_v15, %v219_v14 }
 0x29c   :  { %v258_v17 = vsel %vm257_vm3, %v248_v16, -inf }
 0x29d   :  { %259 = vmax.xlane.f32.xlu0 %v258_v17 }
 0x2a1   :  { %v249_v19 = vpop.f32.mrf.mxu1 }
 0x2a2   :  { %v250_v20 = vadd.f32 %v249_v19, %v219_v14 }
 0x2a4   :  { %v261_v21 = vsel %vm257_vm3, %v250_v20, -inf }
 0x2a5   :  { %262 = vmax.xlane.f32.xlu1 %v261_v21 }
 0x2a7   :  { %v371_v23 = vpop.f32.mrf.mxu3 }
 0x2a8   :  { %v372_v24 = vadd.f32 %v371_v23, %v343_v22 }
 0x2a9   :  { %v252_v25 = vpop.f32.mrf.mxu1 }
 0x2aa   :  { %v253_v26 = vadd.f32 %v252_v25, %v219_v14  ;;  %v381_v27 = vsel %vm257_vm3, %v372_v24, -inf }
 0x2ab   :  { %382 = vmax.xlane.f32.xlu2 %v381_v27 }
 0x2ac   :  { %v264_v28 = vsel %vm257_vm3, %v253_v26, -inf }
 0x2ad   :  { %265 = vmax.xlane.f32.xlu1 %v264_v28 }
 0x2af   :  { %v373_v29 = vpop.f32.mrf.mxu3 }
 0x2b0   :  { %v374_v30 = vadd.f32 %v373_v29, %v343_v22 }
 0x2b1   :  { %v254_v32 = vpop.f32.mrf.mxu1 }
 0x2b2   :  { %v384_v31 = vsel %vm257_vm3, %v374_v30, -inf  ;;  %v255_v33 = vadd.f32 %v254_v32, %v219_v14 }
 0x2b3   :  { %385 = vmax.xlane.f32.xlu0 %v384_v31 }
 0x2b4   :  { %v267_v37 = vsel %vm257_vm3, %v255_v33, -inf }
 0x2b7   :  { %v376_v34 = vpop.f32.mrf.mxu3 }
 0x2b8   :  { %v377_v35 = vadd.f32 %v376_v34, %v343_v22 }
 0x2ba   :  { %v387_v36 = vsel %vm257_vm3, %v377_v35, -inf }
 0x2bb   :  { %388 = vmax.xlane.f32.xlu1 %v387_v36  ;;  %268 = vmax.xlane.f32.xlu0 %v267_v37 }
 0x2bf   :  { %v378_v38 = vpop.f32.mrf.mxu3 }
 0x2c0   :  { %v379_v39 = vadd.f32 %v378_v38, %v343_v22 }
 0x2c2   :  { %v390_v40 = vsel %vm257_vm3, %v379_v39, -inf }
 0x2c3   :  { %391 = vmax.xlane.f32.xlu0 %v390_v40  ;;  %427 = vrot.lane.b32.xlu2 %v2687_v18, %s2605_s15 }
 0x310   :  { %v260_v41 = vpop.xlane.xlu0 %259 }
 0x311   :  { %v270_v42 = vsub.f32 %v248_v16, %v260_v41 }
 0x313   :  { %v274_v43 = vmul.f32 1.442695, %v270_v42 }
 0x315   :  { %2440 = vpow2.f32 %v274_v43 }
 0x318   :  { %v263_v46 = vpop.xlane.xlu1 %262 }
 0x319   :  { %v271_v47 = vsub.f32 %v250_v20, %v263_v46 }
 0x31b   :  { %v2741_v50 = vpop.eup %2440  ;;  %v276_v51 = vmul.f32 1.442695, %v271_v47 }
 0x31c   :  { %v282_v52 = vsel %vm257_vm3, %v2741_v50, 0.0 }
 0x31d   :  { %2442 = vpow2.f32 %v276_v51  ;;  %283 = vadd.xlane.f32.xlu1 %v282_v52 }
 0x31e   :  { %v383_v53 = vpop.xlane.xlu2 %382 }
 0x31f   :  { %v393_v54 = vsub.f32 %v372_v24, %v383_v53 }
 0x320   :  { %v266_v55 = vpop.xlane.xlu1 %265 }
 0x321   :  { %v397_v56 = vmul.f32 1.442695, %v393_v54  ;;  %v272_v57 = vsub.f32 %v253_v26, %v266_v55 }
 0x323   :  { %v2443_v18 = vpop.eup %2442  ;;  %2444 = vpow2.f32 %v397_v56  ;;  %v278_v58 = vmul.f32 1.442695, %v272_v57 }
 0x324   :  { %v285_v59 = vsel %vm257_vm3, %v2443_v18, 0.0 }
 0x325   :  { %2446 = vpow2.f32 %v278_v58  ;;  %286 = vadd.xlane.f32.xlu0 %v285_v59 }
 0x326   :  { %v386_v60 = vpop.xlane.xlu0 %385  ;;  %v428_v61 = vpop.permute.xlu2 %427 }
 0x327   :  { %v394_v62 = vsub.f32 %v374_v30, %v386_v60  ;;  %v436_v3 = vsel %vm312_vm4, %v428_v61, 0 }
 0x328   :  { %445 = vmatpush.bf16.msrb.mxu0 %v436_v3  ;;  %v2016_v3 = vld [vmem:[#allocation2 + $0x12c] sm:$0xf] }
 0x329   :  { %v2445_v6 = vpop.eup %2444  ;;  %v399_v7 = vmul.f32 1.442695, %v394_v62 }
 0x32a   :  { %v405_v8 = vsel %vm257_vm3, %v2445_v6, 0.0 }
 0x32b   :  { %v2447_v9 = vpop.eup %2446  ;;  %2448 = vpow2.f32 %v399_v7  ;;  %406 = vadd.xlane.f32.xlu1 %v405_v8  ;;  %v2012_v7 = vld [vmem:[#allocation2 + $0x4] sm:$0xf] }
 0x32c   :  { %v288_v11 = vsel %vm257_vm3, %v2447_v9, 0.0 }
 0x32d   :  { %289 = vadd.xlane.f32.xlu0 %v288_v11  ;;  %v2332_v11 = vld [vmem:[#allocation2 + $0x94] sm:$0xf0] }
 0x32e   :  { %v269_v12 = vpop.xlane.xlu0 %268  ;;  %v389_v15 = vpop.xlane.xlu1 %388 }
 0x32f   :  { %v273_v14 = vsub.f32 %v255_v33, %v269_v12  ;;  %v395_v19 = vsub.f32 %v377_v35, %v389_v15 }
 0x331   :  { %v2449_v16 = vpop.eup %2448  ;;  %v280_v17 = vmul.f32 1.442695, %v273_v14  ;;  %v401_v21 = vmul.f32 1.442695, %v395_v19 }
 0x332   :  { %v408_v20 = vsel %vm257_vm3, %v2449_v16, 0.0 }
 0x333   :  { %2450 = vpow2.f32 %v280_v17 }
 0x334   :  { %2452 = vpow2.f32 %v401_v21 }
 0x335   :  { %409 = vadd.xlane.f32.xlu0 %v408_v20 }
 0x336   :  { %v392_v26 = vpop.xlane.xlu0 %391 }
 0x337   :  { %v396_v27 = vsub.f32 %v379_v39, %v392_v26 }
 0x339   :  { %v2451_v22 = vpop.eup %2450  ;;  %v403_v28 = vmul.f32 1.442695, %v396_v27 }
 0x33a   :  { %v291_v23 = vsel %vm257_vm3, %v2451_v22, 0.0  ;;  %v2453_v24 = vpop.eup %2452 }
 0x33b   :  { %v411_v25 = vsel %vm257_vm3, %v2453_v24, 0.0  ;;  %2454 = vpow2.f32 %v403_v28 }
 0x33d   :  { %292 = vadd.xlane.f32.xlu0 %v291_v23 }
 0x341   :  { %v2455_v29 = vpop.eup %2454 }
 0x342   :  { %v414_v30 = vsel %vm257_vm3, %v2455_v29, 0.0 }
 0x344   :  { %304 = vrot.lane.b32.xlu1 %v2683_v13, %s2605_s15 }
 0x345   :  { %412 = vadd.xlane.f32.xlu0 %v411_v25 }
 0x36e   :  { %415 = vadd.xlane.f32.xlu1 %v414_v30 }
 0x390   :  { %v284_v32 = vpop.xlane.xlu1 %283 }
 0x398   :  { %v287_v31 = vpop.xlane.xlu0 %286 }
 0x39e   :  { %v407_v34 = vpop.xlane.xlu1 %406 }
 0x39f   :  { %2456 = vrcp.f32 %v407_v34 }
 0x3a0   :  { %v290_v33 = vpop.xlane.xlu0 %289 }
 0x3a5   :  { %v2457_v13 = vpop.eup %2456 }
 0x3a6   :  { %v421_v37 = vmul.f32 %v2457_v13, %v2445_v6  ;;  %v2333_v6 = vld [vmem:[#allocation2 + $0x1bc] sm:$0xf0] }
 0x3a7   :  { %v2017_v8 = vor.u32 %v2333_v6, %v2016_v3  ;;  %v2034_v3 = vld [vmem:[#allocation2 + $0xc] sm:$0xf]  ;;  %v2337_v6 = vld [vmem:[#allocation2 + $0x9c] sm:$0xf0] }
 0x3a8   :  { %v410_v35 = vpop.xlane.xlu0 %409 }
 0x3a9   :  { %2458 = vrcp.f32 %v410_v35 }
 0x3aa   :  { %2460 = vrcp.f32 %v287_v31 }
 0x3ab   :  { %2462 = vrcp.f32 %v284_v32 }
 0x3af   :  { %v2459_v36 = vpop.eup %2458 }
 0x3b0   :  { %v422_v38 = vmul.f32 %v2459_v36, %v2449_v16  ;;  %v2461_v39 = vpop.eup %2460  ;;  %v293_v51 = vpop.xlane.xlu0 %292  ;;  %v2419_v36 = vld [vmem:[#allocation5 + $0x5] ss:$0 sm:$0xff] }
 0x3b1   :  { %v2463_v41 = vpop.eup %2462  ;;  %v299_v42 = vmul.f32 %v2461_v39, %v2443_v18  ;;  %2464 = vrcp.f32 %v293_v51 }
 0x3b2   :  { %v425_v40 = vpack.c.bf16 %v422_v38, %v421_v37  ;;  %v298_v47 = vmul.f32 %v2463_v41, %v2741_v50  ;;  %2466 = vrcp.f32 %v290_v33 }
 0x3b4   :  { %2008 = vmatmul.msk.bf16.vlgmr.msrb.gmra.mxu0 %vm257_vm3, %v425_v40  ;;  %v302_v52 = vpack.c.bf16 %v299_v42, %v298_v47 }
 0x3b6   :  { %v305_v43 = vpop.permute.xlu1 %304 }
 0x3b7   :  { %v314_v46 = vsel %vm312_vm4, %v305_v43, 0  ;;  %v2465_v53 = vpop.eup %2464 }
 0x3b8   :  { %323 = vmatpush.bf16.msra.mxu2 %v314_v46  ;;  %v2467_v54 = vpop.eup %2466  ;;  %v301_v55 = vmul.f32 %v2465_v53, %v2451_v22  ;;  %v413_v18 = vpop.xlane.xlu0 %412 }
 0x3b9   :  { %v300_v56 = vmul.f32 %v2467_v54, %v2447_v9  ;;  %2468 = vrcp.f32 %v413_v18  ;;  %v2013_v9 = vor.u32 %v2332_v11, %v2012_v7  ;;  %v2038_v18 = vld [vmem:[#allocation2 + $0x134] sm:$0xf]  ;;  %v2021_v11 = vld [vmem:[#allocation2 + $0x8] sm:$0xf] }
 0x3bb   :  { %2004 = vmatmul.msk.bf16.vlgmr.msra.gmra.mxu2 %vm257_vm3, %v302_v52  ;;  %v303_v57 = vpack.c.bf16 %v301_v55, %v300_v56 }
 0x3bc   :  { %490 = vmatpush.bf16.msrb.mxu2 %v2017_v8  ;;  %v2035_v8 = vor.u32 %v2337_v6, %v2034_v3 }
 0x3bf   :  { %v2469_v59 = vpop.eup %2468 }
 0x3c0   :  { %v423_v60 = vmul.f32 %v2469_v59, %v2453_v24  ;;  %491 = vmatpush.bf16.msrb.mxu2 %v2013_v9  ;;  %v2334_v9 = vld [vmem:[#allocation2 + $0x98] sm:$0xf0] }
 0x3cb   :  { %2005 = vmatmul.msk.bf16.gmra.mxu2 %vm257_vm3, %v303_v57 }
 0x3e1   :  { %v416_v58 = vpop.xlane.xlu1 %415 }
 0x3e2   :  { %2470 = vrcp.f32 %v416_v58  ;;  %v2338_v58 = vld [vmem:[#allocation2 + $0x1c4] sm:$0xf0] }
 0x3e3   :  { %v2039_v59 = vor.u32 %v2338_v58, %v2038_v18 }
 0x3e5   :  { %658 = vmatpush.bf16.msrb.mxu3 %v2039_v59 }
 0x3e8   :  { %v2471_v50 = vpop.eup %2470 }
 0x3e9   :  { %v424_v61 = vmul.f32 %v2471_v50, %v2455_v29  ;;  %659 = vmatpush.bf16.msrb.mxu3 %v2035_v8 }
 0x3eb   :  { %v426_v62 = vpack.c.bf16 %v424_v61, %v423_v60  ;;  %v2025_v61 = vld [vmem:[#allocation2 + $0x130] sm:$0xf] }
 0x3ed   :  { %2009 = vmatmul.msk.bf16.gmra.mxu0 %vm257_vm3, %v426_v62  ;;  %v2335_v62 = vld [vmem:[#allocation2 + $0x1c0] sm:$0xf0] }
 0x3ee   :  { %v2026_v7 = vor.u32 %v2335_v62, %v2025_v61  ;;  %v2420_v62 = vld [vmem:[#allocation5 + $0xa] ss:$0 sm:$0xff] }
 0x3f0   :  { %616 = vmatpush.bf16.msrb.mxu1 %v2026_v7 }
 0x431   :  { %v447_v14 = vpop.f32.mrf.mxu0 }
 0x432   :  { %v457_v23 = vmul.f32 %v447_v14, %v2691_v44  ;;  %v2022_v14 = vor.u32 %v2334_v9, %v2021_v11  ;;  %v2421_v9 = vld [vmem:[#allocation5 + $0xe] ss:$0 sm:$0xff] }
 0x434   :  { %617 = vmatpush.bf16.msrb.mxu1 %v2022_v14 }
 0x439   :  { %v449_v16 = vpop.f32.mrf.mxu0 }
 0x43a   :  { %v458_v20 = vmul.f32 %v449_v16, %v2693_v45 }
 0x43c   :  { %v461_v27 = vadd.f32 %v458_v20, %v457_v23 }
 0x43e   :  { %v325_v12 = vpop.f32.mrf.mxu2 }
 0x43f   :  { %v335_v24 = vmul.f32 %v325_v12, %v2691_v44  ;;  %v2336_v12 = vld [vmem:[%s3000_s1] sm:$0xff] }
 0x440   :  { %2040 = vmatmul.msk.bf16.vlgmr.msrb.gmra.mxu3 %vm92_vm0, %v2336_v12 }
 0x446   :  { %v327_v15 = vpop.f32.mrf.mxu2 }
 0x447   :  { %v336_v21 = vmul.f32 %v327_v15, %v2693_v45 }
 0x449   :  { %v339_v28 = vadd.f32 %v336_v21, %v335_v24 }
 0x44e   :  { %v330_v17 = vpop.f32.mrf.mxu2 }
 0x44f   :  { %v337_v25 = vmul.f32 %v330_v17, %v2708_v63 }
 0x451   :  { %v340_v31 = vadd.f32 %v339_v28, %v337_v25 }
 0x456   :  { %v332_v22 = vpop.f32.mrf.mxu2 }
 0x457   :  { %v338_v29 = vmul.f32 %v332_v22, %v2710_v1 }
 0x459   :  { %v341_v34 = vadd.f32 %v340_v31, %v338_v29 }
 0x46a   :  { %v452_v19 = vpop.f32.mrf.mxu0 }
 0x46b   :  { %v459_v26 = vmul.f32 %v452_v19, %v2708_v63 }
 0x46d   :  { %v462_v32 = vadd.f32 %v461_v27, %v459_v26 }
 0x472   :  { %v454_v30 = vpop.f32.mrf.mxu0 }
 0x473   :  { %v460_v33 = vmul.f32 %v454_v30, %v2710_v1 }
 0x475   :  { %v463_v35 = vadd.f32 %v462_v32, %v460_v33 }
 0x477   :  { %v468_v13 = vpack.c.bf16 %v463_v35, %v341_v34 }
 0x479   :  { %2018 = vmatmul.msk.bf16.vlgmr.msrb.gmra.mxu2 %vm92_vm0, %v468_v13 }
 0x4fc   :  { %v493_v37 = vpop.f32.mrf.mxu2 }
 0x4fd   :  { %v498_v38 = vadd.f32 %v493_v37, %v2653_v0 }
 0x4ff   :  { %v2771_v39 = vadd.f32 %v2419_v36, %v498_v38 }
 0x501   :  { %v506_v40 = vsel %vm92_vm0, %v2771_v39, 0.0 }
 0x502   :  { %507 = vadd.xlane.f32.xlu2 %v506_v40 }
 0x504   :  { %v495_v41 = vpop.f32.mrf.mxu2 }
 0x505   :  { %v499_v42 = vadd.f32 %v495_v41, %v2660_v2 }
 0x507   :  { %v2776_v43 = vadd.f32 %v2419_v36, %v499_v42 }
 0x509   :  { %v509_v46 = vsel %vm92_vm0, %v2776_v43, 0.0 }
 0x50a   :  { %510 = vadd.xlane.f32.xlu0 %v509_v46 }
 0x575   :  { %v508_v47 = vpop.xlane.xlu2 %507 }
 0x576   :  { %v512_v51 = vmul.f32 %v508_v47, %v2664_v10 }
 0x578   :  { %v2782_v0 = vsub.f32 %v2771_v39, %v512_v51 }
 0x57a   :  { %v516_v52 = vmul.f32 %v2782_v0, %v2782_v0 }
 0x57c   :  { %v518_v53 = vsel %vm92_vm0, %v516_v52, 0.0 }
 0x57d   :  { %519 = vadd.xlane.f32.xlu0 %v518_v53  ;;  %v511_v54 = vpop.xlane.xlu0 %510 }
 0x57e   :  { %v513_v2 = vmul.f32 %v511_v54, %v2664_v10 }
 0x580   :  { %v2789_v55 = vsub.f32 %v2776_v43, %v513_v2 }
 0x582   :  { %v517_v56 = vmul.f32 %v2789_v55, %v2789_v55 }
 0x584   :  { %v521_v57 = vsel %vm92_vm0, %v517_v56, 0.0 }
 0x585   :  { %522 = vadd.xlane.f32.xlu0 %v521_v57 }
 0x5f0   :  { %v520_v50 = vpop.xlane.xlu0 %519 }
 0x5f1   :  { %v524_v60 = vmul.f32 0.032258064, %v520_v50 }
 0x5f3   :  { %2472 = vrsqrt.f32 %v524_v60  ;;  %vm533_vm5 = vcmp.eq.f32.partialorder %v524_v60, inf  ;;  %v536_v28 = vand.u32 2147483648, %v524_v60  ;;  %vm535_vm6 = vcmp.eq.f32.partialorder %v524_v60, 0.0 }
 0x5f8   :  { %v523_v15 = vpop.xlane.xlu0 %522 }
 0x5f9   :  { %v2473_v16 = vpop.eup %2472  ;;  %v525_v17 = vmul.f32 0.032258064, %v523_v15 }
 0x5fa   :  { %v527_v19 = vmul.f32 %v2473_v16, %v524_v60 }
 0x5fb   :  { %2474 = vrsqrt.f32 %v525_v17  ;;  %vm545_vm7 = vcmp.eq.f32.partialorder %v525_v17, inf  ;;  %v548_v13 = vand.u32 2147483648, %v525_v17  ;;  %vm547_vm8 = vcmp.eq.f32.partialorder %v525_v17, 0.0 }
 0x5fc   :  { %v528_v20 = vmul.f32 %v2473_v16, %v527_v19  ;;  %v661_v19 = vpop.f32.mrf.mxu3 }
 0x5fe   :  { %v529_v21 = vmul.f32 0.5, %v528_v20 }
 0x600   :  { %v530_v22 = vsub.f32 1.5, %v529_v21 }
 0x601   :  { %v2475_v23 = vpop.eup %2474 }
 0x602   :  { %v531_v24 = vmul.f32 %v2473_v16, %v530_v22  ;;  %v539_v25 = vmul.f32 %v2475_v23, %v525_v17 }
 0x604   :  { %v532_v26 = vmul.f32 %v531_v24, %v524_v60  ;;  %v540_v27 = vmul.f32 %v2475_v23, %v539_v25  ;;  %v663_v22 = vpop.f32.mrf.mxu3  ;;  %v2423_v25 = vld [vmem:[#allocation5 + $0x9] ss:$0 sm:$0xff] }
 0x606   :  { %v534_v29 = vsel %vm533_vm5, %v524_v60, %v532_v26  ;;  %v541_v30 = vmul.f32 0.5, %v540_v27 }
 0x607   :  { %v537_v31 = vsel %vm535_vm6, %v536_v28, %v534_v29 }
 0x608   :  { %v550_v32 = vadd.f32 1e-06, %v537_v31  ;;  %v542_v33 = vsub.f32 1.5, %v541_v30 }
 0x60a   :  { %2476 = vrcp.f32 %v550_v32  ;;  %v543_v34 = vmul.f32 %v2475_v23, %v542_v33  ;;  %v563_v47 = vand.u32 2147483648, %v550_v32  ;;  %vm557_vm10 = vweird.f32 %v550_v32 }
 0x60b   :  { %v561_v52 = vand.u32 2147483647, %v550_v32 }
 0x60c   :  { %v544_v35 = vmul.f32 %v543_v34, %v525_v17  ;;  %v564_v56 = vor.u32 1.1754944e-38, %v563_v47 }
 0x60d   :  { %vm562_vm12 = vcmp.eq.f32.partialorder %v561_v52, 8.507059e+37 }
 0x60e   :  { %v546_v36 = vsel %vm545_vm7, %v525_v17, %v544_v35  ;;  %v2422_v17 = vld [vmem:[#allocation5 + $0xd] ss:$0 sm:$0xff] }
 0x60f   :  { %v549_v37 = vsel %vm547_vm8, %v548_v13, %v546_v36  ;;  %v662_v20 = vadd.f32 %v2422_v17, %v661_v19  ;;  %v664_v23 = vadd.f32 %v2422_v17, %v663_v22 }
 0x610   :  { %v2477_v38 = vpop.eup %2476  ;;  %v551_v40 = vadd.f32 1e-06, %v549_v37 }
 0x611   :  { %v553_v41 = vmul.f32 %v2477_v38, %v550_v32  ;;  %vm558_vm9 = vweird.f32 %v2477_v38 }
 0x612   :  { %2478 = vrcp.f32 %v551_v40  ;;  %vm559_vm11 = vmor %vm557_vm10, %vm558_vm9  ;;  %v577_v58 = vand.u32 2147483648, %v551_v40  ;;  %v575_v50 = vand.u32 2147483647, %v551_v40  ;;  %vm571_vm14 = vweird.f32 %v551_v40 }
 0x613   :  { %v554_v42 = vsub.f32 1.0, %v553_v41 }
 0x614   :  { %v578_v3 = vor.u32 1.1754944e-38, %v577_v58  ;;  %vm576_vm1 = vcmp.eq.f32.partialorder %v575_v50, 8.507059e+37 }
 0x615   :  { %v555_v46 = vmul.f32 %v2477_v38, %v554_v42 }
 0x617   :  { %v556_v51 = vadd.f32 %v2477_v38, %v555_v46 }
 0x618   :  { %v2479_v53 = vpop.eup %2478 }
 0x619   :  { %v560_v54 = vsel %vm559_vm11, %v2477_v38, %v556_v51  ;;  %v567_v2 = vmul.f32 %v2479_v53, %v551_v40  ;;  %vm572_vm13 = vweird.f32 %v2479_v53 }
 0x61a   :  { %v565_v18 = vsel %vm562_vm12, %v564_v56, %v560_v54  ;;  %vm573_vm15 = vmor %vm571_vm14, %vm572_vm13 }
 0x61b   :  { %v568_v57 = vsub.f32 1.0, %v567_v2  ;;  %v580_v61 = vmul.f32 %v565_v18, %v2782_v0  ;;  %v2801_v0 = vpack.c.bf16 %v662_v20, %v662_v20 }
 0x61d   :  { %v569_v59 = vmul.f32 %v2479_v53, %v568_v57  ;;  %v583_v11 = vmul.f32 %v2420_v62, %v580_v61  ;;  %v682_v21 = vsel %vm92_vm0, %v2801_v0, 0 }
 0x61e   :  { %691 = vmatpush.bf16.xpose.msra.mxu2 %v682_v21 }
 0x61f   :  { %v570_v60 = vadd.f32 %v2479_v53, %v569_v59  ;;  %v586_v14 = vadd.f32 %v2421_v9, %v583_v11 }
 0x621   :  { %v574_v6 = vsel %vm573_vm15, %v2479_v53, %v570_v60 }
 0x622   :  { %v579_v7 = vsel %vm576_vm1, %v578_v3, %v574_v6 }
 0x623   :  { %v581_v8 = vmul.f32 %v579_v7, %v2789_v55  ;;  %v2805_v55 = vpack.c.bf16 %v664_v23, %v664_v23 }
 0x625   :  { %v584_v12 = vmul.f32 %v2420_v62, %v581_v8  ;;  %v807_v24 = vsel %vm92_vm0, %v2805_v55, 0 }
 0x626   :  { %816 = vmatpush.bf16.xpose.msra.mxu1 %v807_v24 }
 0x627   :  { %v587_v15 = vadd.f32 %v2421_v9, %v584_v12 }
 0x629   :  { %v592_v16 = vpack.c.bf16 %v587_v15, %v586_v14 }
 0x62b   :  { %2027 = vmatmul.msk.bf16.vlgmr.msrb.gmra.mxu1 %vm92_vm0, %v592_v16 }
 0x6a8   :  { %v619_v26 = vpop.f32.mrf.mxu1 }
 0x6a9   :  { %v620_v27 = vadd.f32 %v2423_v25, %v619_v26 }
 0x6ab   :  { %v668_v28 = vmul.f32 %v620_v27, %v2696_v48  ;;  %v669_v29 = vmul.f32 %v620_v27, %v2699_v49  ;;  %v670_v13 = vmul.f32 %v620_v27, %v2713_v4  ;;  %v671_v36 = vmul.f32 %v620_v27, %v2716_v5 }
 0x6ad   :  { %v672_v30 = vpack.c.bf16 %v669_v29, %v668_v28  ;;  %v673_v37 = vpack.c.bf16 %v671_v36, %v670_v13 }
 0x6af   :  { %2041 = vmatmul.msk.bf16.vlgmr.msra.gmra.mxu2 %vm92_vm0, %v672_v30 }
 0x6b0   :  { %v621_v31 = vpop.f32.mrf.mxu1 }
 0x6b1   :  { %v622_v32 = vadd.f32 %v2423_v25, %v621_v31 }
 0x6b3   :  { %v793_v33 = vmul.f32 %v622_v32, %v2696_v48  ;;  %v794_v34 = vmul.f32 %v622_v32, %v2699_v49  ;;  %v795_v38 = vmul.f32 %v622_v32, %v2713_v4  ;;  %v796_v40 = vmul.f32 %v622_v32, %v2716_v5  ;;  %v2424_v48 = vld [vmem:[%s3001_s2 + $0x10] ss:$0 sm:$0xff]  ;;  %v2425_v49 = vld [vmem:[%s3001_s2 + $0x11] ss:$0 sm:$0xff] }
 0x6b5   :  { %v797_v35 = vpack.c.bf16 %v794_v34, %v793_v33  ;;  %v798_v41 = vpack.c.bf16 %v796_v40, %v795_v38 }
 0x6b7   :  { %2045 = vmatmul.msk.bf16.vlgmr.msra.gmra.mxu1 %vm92_vm0, %v797_v35 }
 0x6bf   :  { %2042 = vmatmul.msk.bf16.gmra.mxu2 %vm92_vm0, %v673_v37 }
 0x6c7   :  { %2046 = vmatmul.msk.bf16.gmra.mxu1 %vm92_vm0, %v798_v41 }
 0x732   :  { %v693_v42 = vpop.f32.mrf.mxu2 }
 0x733   :  { %v694_v46 = vadd.f32 %v2424_v48, %v693_v42 }
 0x734   :  { %v818_v47 = vpop.f32.mrf.mxu1 }
 0x735   :  { %v819_v51 = vadd.f32 %v2425_v49, %v818_v47  ;;  %v703_v52 = vsel %vm257_vm3, %v694_v46, -inf }
 0x736   :  { %704 = vmax.xlane.f32.xlu2 %v703_v52 }
 0x737   :  { %v828_v4 = vsel %vm257_vm3, %v819_v51, -inf }
 0x738   :  { %829 = vmax.xlane.f32.xlu0 %v828_v4 }
 0x73a   :  { %v695_v5 = vpop.f32.mrf.mxu2 }
 0x73b   :  { %v696_v53 = vadd.f32 %v2424_v48, %v695_v5 }
 0x73c   :  { %v820_v54 = vpop.f32.mrf.mxu1 }
 0x73d   :  { %v821_v2 = vadd.f32 %v2425_v49, %v820_v54  ;;  %v706_v56 = vsel %vm257_vm3, %v696_v53, -inf }
 0x73e   :  { %707 = vmax.xlane.f32.xlu1 %v706_v56 }
 0x73f   :  { %v831_v57 = vsel %vm257_vm3, %v821_v2, -inf }
 0x740   :  { %832 = vmax.xlane.f32.xlu0 %v831_v57 }
 0x742   :  { %v698_v18 = vpop.f32.mrf.mxu2 }
 0x743   :  { %v699_v58 = vadd.f32 %v2424_v48, %v698_v18 }
 0x744   :  { %v823_v59 = vpop.f32.mrf.mxu1 }
 0x745   :  { %v824_v50 = vadd.f32 %v2425_v49, %v823_v59  ;;  %v709_v60 = vsel %vm257_vm3, %v699_v58, -inf }
 0x746   :  { %710 = vmax.xlane.f32.xlu1 %v709_v60 }
 0x747   :  { %v834_v61 = vsel %vm257_vm3, %v824_v50, -inf }
 0x748   :  { %835 = vmax.xlane.f32.xlu0 %v834_v61 }
 0x74a   :  { %v700_v62 = vpop.f32.mrf.mxu2 }
 0x74b   :  { %v701_v3 = vadd.f32 %v2424_v48, %v700_v62 }
 0x74c   :  { %v825_v6 = vpop.f32.mrf.mxu1 }
 0x74d   :  { %v826_v7 = vadd.f32 %v2425_v49, %v825_v6  ;;  %v712_v8 = vsel %vm257_vm3, %v701_v3, -inf }
 0x74f   :  { %v837_v11 = vsel %vm257_vm3, %v826_v7, -inf }
 0x750   :  { %713 = vmax.xlane.f32.xlu0 %v712_v8  ;;  %838 = vmax.xlane.f32.xlu2 %v837_v11 }
 0x7a9   :  { %v705_v9 = vpop.xlane.xlu2 %704 }
 0x7aa   :  { %v715_v12 = vsub.f32 %v694_v46, %v705_v9 }
 0x7ab   :  { %v830_v14 = vpop.xlane.xlu0 %829 }
 0x7ac   :  { %v719_v15 = vmul.f32 1.442695, %v715_v12  ;;  %v840_v16 = vsub.f32 %v819_v51, %v830_v14 }
 0x7ae   :  { %2480 = vpow2.f32 %v719_v15  ;;  %v844_v17 = vmul.f32 1.442695, %v840_v16 }
 0x7b0   :  { %2482 = vpow2.f32 %v844_v17 }
 0x7b1   :  { %v708_v19 = vpop.xlane.xlu1 %707 }
 0x7b2   :  { %v716_v20 = vsub.f32 %v696_v53, %v708_v19 }
 0x7b3   :  { %v833_v21 = vpop.xlane.xlu0 %832 }
 0x7b4   :  { %v2481_v22 = vpop.eup %2480  ;;  %v721_v23 = vmul.f32 1.442695, %v716_v20  ;;  %v841_v24 = vsub.f32 %v821_v2, %v833_v21 }
 0x7b5   :  { %v727_v25 = vsel %vm257_vm3, %v2481_v22, 0.0 }
 0x7b6   :  { %v2483_v26 = vpop.eup %2482  ;;  %2484 = vpow2.f32 %v721_v23  ;;  %v846_v27 = vmul.f32 1.442695, %v841_v24  ;;  %728 = vadd.xlane.f32.xlu0 %v727_v25 }
 0x7b7   :  { %v852_v28 = vsel %vm257_vm3, %v2483_v26, 0.0 }
 0x7b8   :  { %2486 = vpow2.f32 %v846_v27  ;;  %853 = vadd.xlane.f32.xlu2 %v852_v28  ;;  %v2055_v28 = vld [vmem:[#allocation2 + $0x138] sm:$0xf] }
 0x7b9   :  { %v711_v36 = vpop.xlane.xlu1 %710 }
 0x7ba   :  { %v717_v41 = vsub.f32 %v699_v58, %v711_v36 }
 0x7bb   :  { %v836_v29 = vpop.xlane.xlu0 %835 }
 0x7bc   :  { %v2485_v30 = vpop.eup %2484  ;;  %v842_v31 = vsub.f32 %v824_v50, %v836_v29  ;;  %v723_v49 = vmul.f32 1.442695, %v717_v41  ;;  %v2340_v29 = vld [vmem:[#allocation2 + $0x1c8] sm:$0xf0] }
 0x7bd   :  { %v730_v35 = vsel %vm257_vm3, %v2485_v30, 0.0 }
 0x7be   :  { %v2487_v32 = vpop.eup %2486  ;;  %v848_v33 = vmul.f32 1.442695, %v842_v31  ;;  %v2051_v31 = vld [vmem:[#allocation2 + $0x10] sm:$0xf] }
 0x7bf   :  { %v855_v34 = vsel %vm257_vm3, %v2487_v32, 0.0 }
 0x7c0   :  { %2488 = vpow2.f32 %v848_v33  ;;  %856 = vadd.xlane.f32.xlu1 %v855_v34  ;;  %731 = vadd.xlane.f32.xlu2 %v730_v35 }
 0x7c3   :  { %v839_v13 = vpop.xlane.xlu2 %838  ;;  %v714_v52 = vpop.xlane.xlu0 %713 }
 0x7c4   :  { %v843_v37 = vsub.f32 %v826_v7, %v839_v13  ;;  %v718_v4 = vsub.f32 %v701_v3, %v714_v52 }
 0x7c6   :  { %v2489_v38 = vpop.eup %2488  ;;  %v850_v40 = vmul.f32 1.442695, %v843_v37  ;;  %v725_v5 = vmul.f32 1.442695, %v718_v4 }
 0x7c7   :  { %v858_v48 = vsel %vm257_vm3, %v2489_v38, 0.0 }
 0x7c8   :  { %859 = vadd.xlane.f32.xlu2 %v858_v48  ;;  %2490 = vpow2.f32 %v850_v40 }
 0x7c9   :  { %2492 = vpow2.f32 %v723_v49 }
 0x7ca   :  { %750 = vrot.lane.b32.xlu0 %v2801_v0, %s2603_s0  ;;  %2494 = vpow2.f32 %v725_v5 }
 0x7ce   :  { %v2491_v42 = vpop.eup %2490 }
 0x7cf   :  { %v861_v46 = vsel %vm257_vm3, %v2491_v42, 0.0  ;;  %v2493_v47 = vpop.eup %2492 }
 0x7d0   :  { %862 = vadd.xlane.f32.xlu2 %v861_v46  ;;  %v733_v51 = vsel %vm257_vm3, %v2493_v47, 0.0  ;;  %v2495_v53 = vpop.eup %2494 }
 0x7d1   :  { %v736_v0 = vsel %vm257_vm3, %v2495_v53, 0.0 }
 0x7d8   :  { %734 = vadd.xlane.f32.xlu2 %v733_v51 }
 0x7d9   :  { %875 = vrot.lane.b32.xlu1 %v2805_v55, %s2603_s0 }
 0x7f4   :  { %737 = vadd.xlane.f32.xlu0 %v736_v0 }
 0x829   :  { %v729_v54 = vpop.xlane.xlu0 %728 }
 0x82a   :  { %2496 = vrcp.f32 %v729_v54 }
 0x82b   :  { %v854_v2 = vpop.xlane.xlu2 %853 }
 0x82c   :  { %2498 = vrcp.f32 %v854_v2 }
 0x830   :  { %v2497_v56 = vpop.eup %2496 }
 0x831   :  { %v743_v57 = vmul.f32 %v2497_v56, %v2481_v22 }
 0x832   :  { %v2499_v18 = vpop.eup %2498 }
 0x833   :  { %787 = vst.msk [vmem:[%s3005_s6] sm:$0xff] %vm257_vm3, %v743_v57  ;;  %v868_v55 = vmul.f32 %v2499_v18, %v2483_v26  ;;  %v857_v58 = vpop.xlane.xlu1 %856  ;;  %v732_v59 = vpop.xlane.xlu2 %731 }
 0x834   :  { %2500 = vrcp.f32 %v857_v58 }
 0x835   :  { %912 = vst.msk [vmem:[%s3005_s6 + $0x20] sm:$0xff] %vm257_vm3, %v868_v55  ;;  %2502 = vrcp.f32 %v732_v59 }
 0x83a   :  { %v2501_v50 = vpop.eup %2500 }
 0x83b   :  { %v2503_v60 = vpop.eup %2502  ;;  %v869_v61 = vmul.f32 %v2501_v50, %v2487_v32  ;;  %v860_v62 = vpop.xlane.xlu2 %859  ;;  %v2339_v32 = vld [vmem:[#allocation2 + $0xa0] sm:$0xf0] }
 0x83c   :  { %v744_v3 = vmul.f32 %v2503_v60, %v2485_v30  ;;  %2504 = vrcp.f32 %v860_v62  ;;  %v751_v6 = vpop.permute.xlu0 %750  ;;  %v2056_v30 = vor.u32 %v2340_v29, %v2055_v28  ;;  %v2052_v33 = vor.u32 %v2339_v32, %v2051_v31  ;;  %v2357_v31 = vld [vmem:[#allocation2 + $0x140] sm:$0xf]  ;;  %v2126_v32 = vld [vmem:[#allocation2 + $0x1d0] sm:$0xf0] }
 0x83d   :  { %913 = vst.msk [vmem:[%s3005_s6 + $0x28] sm:$0xff] %vm257_vm3, %v869_v61  ;;  %v759_v7 = vsel %vm312_vm4, %v751_v6, 0  ;;  %v872_v20 = vpack.c.bf16 %v869_v61, %v868_v55 }
 0x83e   :  { %788 = vst.msk [vmem:[%s3005_s6 + $0x8] sm:$0xff] %vm257_vm3, %v744_v3  ;;  %768 = vmatpush.bf16.msra.mxu0 %v759_v7  ;;  %v747_v8 = vpack.c.bf16 %v744_v3, %v743_v57  ;;  %942 = vmatpush.bf16.msrb.mxu2 %v2056_v30  ;;  %v2426_v57 = vld [vmem:[#allocation5 + $0x11] ss:$0 sm:$0xff]  ;;  %v2365_v30 = vld [vmem:[#allocation2 + $0x1cc] sm:$0xf0] }
 0x841   :  { %2043 = vmatmul.msk.bf16.vlgmr.msra.gmra.mxu0 %vm257_vm3, %v747_v8 }
 0x842   :  { %v2505_v11 = vpop.eup %2504  ;;  %943 = vmatpush.bf16.msrb.mxu2 %v2052_v33 }
 0x843   :  { %v870_v9 = vmul.f32 %v2505_v11, %v2489_v38  ;;  %v863_v12 = vpop.xlane.xlu2 %862 }
 0x844   :  { %2506 = vrcp.f32 %v863_v12 }
 0x845   :  { %914 = vst.msk [vmem:[%s3005_s6 + $0x30] sm:$0xff] %vm257_vm3, %v870_v9 }
 0x84a   :  { %v2507_v14 = vpop.eup %2506 }
 0x84b   :  { %v876_v15 = vpop.permute.xlu1 %875  ;;  %v735_v17 = vpop.xlane.xlu2 %734  ;;  %v871_v19 = vmul.f32 %v2507_v14, %v2491_v42 }
 0x84c   :  { %v884_v16 = vsel %vm312_vm4, %v876_v15, 0  ;;  %2508 = vrcp.f32 %v735_v17 }
 0x84d   :  { %893 = vmatpush.bf16.msra.mxu3 %v884_v16  ;;  %915 = vst.msk [vmem:[%s3005_s6 + $0x38] sm:$0xff] %vm257_vm3, %v871_v19  ;;  %v873_v23 = vpack.c.bf16 %v871_v19, %v870_v9 }
 0x850   :  { %2047 = vmatmul.msk.bf16.vlgmr.msra.gmra.mxu3 %vm257_vm3, %v872_v20 }
 0x852   :  { %v2509_v21 = vpop.eup %2508 }
 0x853   :  { %v745_v22 = vmul.f32 %v2509_v21, %v2493_v47 }
 0x855   :  { %789 = vst.msk [vmem:[%s3005_s6 + $0x10] sm:$0xff] %vm257_vm3, %v745_v22 }
 0x860   :  { %2048 = vmatmul.msk.bf16.gmra.mxu3 %vm257_vm3, %v873_v23 }
 0x867   :  { %v738_v24 = vpop.xlane.xlu0 %737 }
 0x868   :  { %2510 = vrcp.f32 %v738_v24  ;;  %v2132_v24 = vld [vmem:[#allocation2 + $0x144] sm:$0xf] }
 0x86e   :  { %v2511_v25 = vpop.eup %2510 }
 0x86f   :  { %v746_v26 = vmul.f32 %v2511_v25, %v2495_v53  ;;  %v2366_v25 = vld [vmem:[#allocation2 + $0x1d4] sm:$0xf0] }
 0x870   :  { %v2133_v29 = vor.u32 %v2366_v25, %v2132_v24 }
 0x871   :  { %v748_v27 = vpack.c.bf16 %v746_v26, %v745_v22  ;;  %790 = vst.msk [vmem:[%s3005_s6 + $0x18] sm:$0xff] %vm257_vm3, %v746_v26  ;;  %v2124_v26 = vld [vmem:[#allocation2 + $0x13c] sm:$0xf]  ;;  %s2606_s6 = smov [#allocation7]  }
 0x872   :  { %1307 = vmatpush.bf16.msrb.mxu3 %v2133_v29  ;;  %s1973_s10 = sshll.u32 %s2606_s6, 4  ;;  %s1974_s10 = int_to_ptr.vmem [resolvable:$true] %s1973_s10 }
 0x873   :  { %2044 = vmatmul.msk.bf16.gmra.mxu0 %vm257_vm3, %v748_v27 }
 0x8be   :  { %v770_v35 = vpop.f32.mrf.mxu0 }
 0x8bf   :  { %v780_v49 = vmul.f32 %v770_v35, %v2691_v44  ;;  %v2129_v35 = vor.u32 %v2357_v31, %v2126_v32 }
 0x8c1   :  { %1293 = vmatpush.bf16.msrb.mxu1 %v2129_v35 }
 0x8c6   :  { %v772_v36 = vpop.f32.mrf.mxu0 }
 0x8c7   :  { %v781_v40 = vmul.f32 %v772_v36, %v2693_v45  ;;  %v2134_v36 = vld [vmem:[#allocation2 + $0x1d8] sm:$0xf0] }
 0x8c9   :  { %v784_v51 = vadd.f32 %v781_v40, %v780_v49  ;;  %v2350_v49 = vld [vmem:[#allocation2 + $0xac] sm:$0xf0] }
 0x8d3   :  { %v895_v34 = vpop.f32.mrf.mxu3 }
 0x8d4   :  { %v905_v42 = vmul.f32 %v895_v34, %v2691_v44  ;;  %v2125_v34 = vor.u32 %v2365_v30, %v2124_v26  ;;  %v2343_v26 = vld [vmem:[#allocation2 + $0x28] sm:$0xf] }
 0x8d6   :  { %1279 = vmatpush.bf16.msrb.mxu0 %v2125_v34 }
 0x8db   :  { %v897_v13 = vpop.f32.mrf.mxu3 }
 0x8dc   :  { %v906_v41 = vmul.f32 %v897_v13, %v2693_v45  ;;  %v2358_v13 = vld [vmem:[#allocation2 + $0x148] sm:$0xf] }
 0x8dd   :  { %v2137_v40 = vor.u32 %v2358_v13, %v2134_v36 }
 0x8de   :  { %v909_v52 = vadd.f32 %v906_v41, %v905_v42  ;;  %v2060_v42 = vld [vmem:[#allocation2 + $0x14] sm:$0xf] }
 0x8df   :  { %1321 = vmatpush.bf16.msra.mxu2 %v2137_v40 }
 0x8e3   :  { %v900_v37 = vpop.f32.mrf.mxu3 }
 0x8e4   :  { %v907_v46 = vmul.f32 %v900_v37, %v2708_v63 }
 0x8e6   :  { %v910_v53 = vadd.f32 %v909_v52, %v907_v46  ;;  %v2349_v52 = vld [vmem:[#allocation2 + $0xa4] sm:$0xf0] }
 0x8eb   :  { %v902_v48 = vpop.f32.mrf.mxu3 }
 0x8ec   :  { %v908_v4 = vmul.f32 %v902_v48, %v2710_v1  ;;  %v2068_v48 = vld [vmem:[#allocation2 + $0x1c] sm:$0xf] }
 0x8ee   :  { %v911_v2 = vadd.f32 %v910_v53, %v908_v4  ;;  %v2061_v4 = vor.u32 %v2349_v52, %v2060_v42  ;;  %v2062_v53 = vld [vmem:[#allocation2 + $0xa8] sm:$0xf0]  ;;  %v2428_v52 = vld [vmem:[#allocation5 + $0x16] ss:$0 sm:$0xff] }
 0x8f0   :  { %v775_v38 = vpop.f32.mrf.mxu0  ;;  %1280 = vmatpush.bf16.msrb.mxu0 %v2061_v4 }
 0x8f1   :  { %v782_v47 = vmul.f32 %v775_v38, %v2708_v63 }
 0x8f3   :  { %v785_v0 = vadd.f32 %v784_v51, %v782_v47  ;;  %v2069_v51 = vor.u32 %v2350_v49, %v2068_v48  ;;  %v2427_v48 = vld [vmem:[#allocation5 + $0x12] ss:$0 sm:$0xff] }
 0x8f5   :  { %1308 = vmatpush.bf16.msrb.mxu3 %v2069_v51 }
 0x8f8   :  { %v777_v5 = vpop.f32.mrf.mxu0 }
 0x8f9   :  { %v783_v54 = vmul.f32 %v777_v5, %v2710_v1  ;;  %v2341_v5 = vld [vmem:[#allocation2 + $0x18] sm:$0xf] }
 0x8fb   :  { %v786_v45 = vadd.f32 %v785_v0, %v783_v54  ;;  %v2342_v0 = vld [vmem:[#allocation2 + $0x20] sm:$0xf]  ;;  %v2070_v54 = vld [vmem:[#allocation2 + $0xb0] sm:$0xf0] }
 0x8fd   :  { %v920_v56 = vpack.c.bf16 %v911_v2, %v786_v45  ;;  %v2065_v45 = vor.u32 %v2341_v5, %v2062_v53 }
 0x8ff   :  { %2057 = vmatmul.msk.bf16.vlgmr.msrb.gmra.mxu2 %vm92_vm0, %v920_v56  ;;  %v2073_v56 = vor.u32 %v2342_v0, %v2070_v54  ;;  %1294 = vmatpush.bf16.msrb.mxu1 %v2065_v45  ;;  %v2164_v0 = vld [vmem:[#allocation2 + $0x164] sm:$0xf]  ;;  %v2370_v54 = vld [vmem:[#allocation2 + $0x1f4] sm:$0xf0]  ;;  %v2166_v45 = vld [vmem:[#allocation2 + $0x1f8] sm:$0xf0] }
 0x901   :  { %1322 = vmatpush.bf16.msra.mxu2 %v2073_v56  ;;  %v2156_v56 = vld [vmem:[#allocation2 + $0x15c] sm:$0xf] }
 0x982   :  { %v945_v44 = vpop.f32.mrf.mxu2 }
 0x983   :  { %v950_v18 = vadd.f32 %v945_v44, %v2771_v39 }
 0x985   :  { %v2895_v55 = vadd.f32 %v2426_v57, %v950_v18  ;;  %v2148_v18 = vld [vmem:[#allocation2 + $0x154] sm:$0xf] }
 0x987   :  { %v958_v63 = vsel %vm92_vm0, %v2895_v55, 0.0 }
 0x988   :  { %959 = vadd.xlane.f32.xlu1 %v958_v63  ;;  %v2368_v63 = vld [vmem:[#allocation2 + $0x1e4] sm:$0xf0] }
 0x98a   :  { %v947_v58 = vpop.f32.mrf.mxu2 }
 0x98b   :  { %v951_v59 = vadd.f32 %v947_v58, %v2776_v43  ;;  %v2360_v58 = vld [vmem:[#allocation2 + $0x158] sm:$0xf] }
 0x98d   :  { %v2900_v50 = vadd.f32 %v2426_v57, %v951_v59  ;;  %v2149_v59 = vor.u32 %v2368_v63, %v2148_v18  ;;  %v2361_v18 = vld [vmem:[#allocation2 + $0x160] sm:$0xf]  ;;  %v2158_v63 = vld [vmem:[#allocation2 + $0x1f0] sm:$0xf0] }
 0x98f   :  { %v961_v1 = vsel %vm92_vm0, %v2900_v50, 0.0  ;;  %1363 = vmatpush.bf16.msra.mxu3 %v2149_v59  ;;  %v2165_v59 = vor.u32 %v2370_v54, %v2164_v0  ;;  %v2204_v54 = vld [vmem:[#allocation2 + $0x54] sm:$0xf] }
 0x990   :  { %962 = vadd.xlane.f32.xlu2 %v961_v1  ;;  %v2150_v1 = vld [vmem:[#allocation2 + $0x1e8] sm:$0xf0] }
 0x9fb   :  { %v960_v60 = vpop.xlane.xlu1 %959 }
 0x9fc   :  { %v964_v61 = vmul.f32 %v960_v60, %v2664_v10  ;;  %v2140_v60 = vld [vmem:[#allocation2 + $0x14c] sm:$0xf] }
 0x9fe   :  { %v2906_v39 = vsub.f32 %v2895_v55, %v964_v61  ;;  %v2367_v61 = vld [vmem:[#allocation2 + $0x1dc] sm:$0xf0] }
 0xa00   :  { %v968_v62 = vmul.f32 %v2906_v39, %v2906_v39 }
 0xa02   :  { %v970_v3 = vsel %vm92_vm0, %v968_v62, 0.0 }
 0xa03   :  { %971 = vadd.xlane.f32.xlu2 %v970_v3  ;;  %v963_v6 = vpop.xlane.xlu2 %962  ;;  %v2153_v3 = vor.u32 %v2360_v58, %v2150_v1 }
 0xa04   :  { %v965_v43 = vmul.f32 %v963_v6, %v2664_v10  ;;  %v2141_v6 = vor.u32 %v2367_v61, %v2140_v60  ;;  %v2100_v60 = vld [vmem:[#allocation2 + $0x3c] sm:$0xf]  ;;  %v2354_v61 = vld [vmem:[#allocation2 + $0xcc] sm:$0xf0] }
 0xa05   :  { %1377 = vmatpush.bf16.msrb.mxu2 %v2153_v3  ;;  %v2161_v3 = vor.u32 %v2361_v18, %v2158_v63  ;;  %v2382_v18 = vld [vmem:[#allocation2 + $0xec] sm:$0xf0]  ;;  %v2374_v63 = vld [vmem:[#allocation2 + $0x60] sm:$0xf] }
 0xa06   :  { %v2913_v7 = vsub.f32 %v2900_v50, %v965_v43  ;;  %v2084_v43 = vld [vmem:[#allocation2 + $0x2c] sm:$0xf]  ;;  %1335 = vmatpush.bf16.msra.mxu0 %v2141_v6  ;;  %v2102_v6 = vld [vmem:[#allocation2 + $0xd0] sm:$0xf0] }
 0xa08   :  { %v969_v8 = vmul.f32 %v2913_v7, %v2913_v7 }
 0xa0a   :  { %v973_v11 = vsel %vm92_vm0, %v969_v8, 0.0  ;;  %v2352_v8 = vld [vmem:[#allocation2 + $0xbc] sm:$0xf0] }
 0xa0b   :  { %974 = vadd.xlane.f32.xlu2 %v973_v11  ;;  %v2359_v11 = vld [vmem:[#allocation2 + $0x150] sm:$0xf] }
 0xa76   :  { %v972_v9 = vpop.xlane.xlu2 %971 }
 0xa77   :  { %v976_v12 = vmul.f32 0.032258064, %v972_v9 }
 0xa79   :  { %2512 = vrsqrt.f32 %v976_v12  ;;  %vm985_vm2 = vcmp.eq.f32.partialorder %v976_v12, inf  ;;  %v988_v33 = vand.u32 2147483648, %v976_v12  ;;  %vm987_vm3 = vcmp.eq.f32.partialorder %v976_v12, 0.0 }
 0xa7e   :  { %v975_v14 = vpop.xlane.xlu2 %974 }
 0xa7f   :  { %v2513_v15 = vpop.eup %2512  ;;  %v2918_v16 = vmul.f32 0.032258064, %v975_v14  ;;  %v2085_v14 = vor.u32 %v2352_v8, %v2084_v43  ;;  %v2092_v43 = vld [vmem:[#allocation2 + $0x34] sm:$0xf]  ;;  %v2353_v8 = vld [vmem:[#allocation2 + $0xc4] sm:$0xf0] }
 0xa80   :  { %v979_v17 = vmul.f32 %v2513_v15, %v976_v12 }
 0xa81   :  { %2514 = vrsqrt.f32 %v2918_v16  ;;  %vm997_vm4 = vcmp.eq.f32.partialorder %v2918_v16, inf  ;;  %vm999_vm5 = vcmp.eq.f32.partialorder %v2918_v16, 0.0  ;;  %v1000_v57 = vand.u32 2147483648, %v2918_v16  ;;  %1364 = vmatpush.bf16.msra.mxu3 %v2085_v14 }
 0xa82   :  { %v980_v10 = vmul.f32 %v2513_v15, %v979_v17  ;;  %v2344_v17 = vld [vmem:[#allocation2 + $0x30] sm:$0xf] }
 0xa84   :  { %v981_v19 = vmul.f32 0.5, %v980_v10  ;;  %v2086_v10 = vld [vmem:[#allocation2 + $0xc0] sm:$0xf0] }
 0xa85   :  { %v2089_v24 = vor.u32 %v2344_v17, %v2086_v10  ;;  %v2180_v10 = vld [vmem:[#allocation2 + $0x174] sm:$0xf] }
 0xa86   :  { %v982_v20 = vsub.f32 1.5, %v981_v19 }
 0xa87   :  { %v2515_v21 = vpop.eup %2514  ;;  %1378 = vmatpush.bf16.msrb.mxu2 %v2089_v24  ;;  %v2363_v24 = vld [vmem:[#allocation2 + $0x170] sm:$0xf] }
 0xa88   :  { %v983_v22 = vmul.f32 %v2513_v15, %v982_v20  ;;  %v991_v23 = vmul.f32 %v2515_v21, %v2918_v16  ;;  %v2142_v15 = vld [vmem:[#allocation2 + $0x1e0] sm:$0xf0] }
 0xa8a   :  { %v984_v27 = vmul.f32 %v983_v22, %v976_v12  ;;  %v992_v28 = vmul.f32 %v2515_v21, %v991_v23  ;;  %v2076_v22 = vld [vmem:[#allocation2 + $0x24] sm:$0xf]  ;;  %v2351_v23 = vld [vmem:[#allocation2 + $0xb4] sm:$0xf0] }
 0xa8b   :  { %v2077_v25 = vor.u32 %v2351_v23, %v2076_v22  ;;  %v2172_v22 = vld [vmem:[#allocation2 + $0x16c] sm:$0xf]  ;;  %v2371_v23 = vld [vmem:[#allocation2 + $0x1fc] sm:$0xf0] }
 0xa8c   :  { %v986_v37 = vsel %vm985_vm2, %v976_v12, %v984_v27  ;;  %v993_v38 = vmul.f32 0.5, %v992_v28  ;;  %v2078_v27 = vld [vmem:[#allocation2 + $0xb8] sm:$0xf0] }
 0xa8d   :  { %v989_v41 = vsel %vm987_vm3, %v988_v33, %v986_v37  ;;  %1336 = vmatpush.bf16.msra.mxu0 %v2077_v25  ;;  %v2174_v25 = vld [vmem:[#allocation2 + $0x200] sm:$0xf0] }
 0xa8e   :  { %v2922_v46 = vadd.f32 1e-06, %v989_v41  ;;  %v994_v47 = vsub.f32 1.5, %v993_v38 }
 0xa90   :  { %2516 = vrcp.f32 %v2922_v46  ;;  %v995_v2 = vmul.f32 %v2515_v21, %v994_v47  ;;  %v2145_v21 = vor.u32 %v2359_v11, %v2142_v15  ;;  %v1015_v31 = vand.u32 2147483648, %v2922_v46  ;;  %v2345_v11 = vld [vmem:[#allocation2 + $0x38] sm:$0xf] }
 0xa91   :  { %vm1009_vm7 = vweird.f32 %v2922_v46  ;;  %v1013_v32 = vand.u32 2147483647, %v2922_v46  ;;  %v2093_v15 = vor.u32 %v2353_v8, %v2092_v43  ;;  %v2292_v43 = vld [vmem:[#allocation2 + $0x194] sm:$0xf]  ;;  %v2400_v8 = vld [vmem:[#allocation2 + $0x224] sm:$0xf0] }
 0xa92   :  { %v996_v44 = vmul.f32 %v995_v2, %v2918_v16  ;;  %1349 = vmatpush.bf16.msra.mxu1 %v2145_v21  ;;  %v1016_v13 = vor.u32 1.1754944e-38, %v1015_v31  ;;  %v2362_v2 = vld [vmem:[#allocation2 + $0x168] sm:$0xf]  ;;  %v2182_v21 = vld [vmem:[#allocation2 + $0x208] sm:$0xf0] }
 0xa93   :  { %vm1014_vm9 = vcmp.eq.f32.partialorder %v1013_v32, 8.507059e+37  ;;  %v2169_v1 = vor.u32 %v2362_v2, %v2166_v45  ;;  %v2348_v31 = vld [vmem:[#allocation2 + $0x50] sm:$0xf]  ;;  %v2118_v32 = vld [vmem:[#allocation2 + $0xe0] sm:$0xf0] }
 0xa94   :  { %v998_v62 = vsel %vm997_vm4, %v2918_v16, %v996_v44  ;;  %v2081_v16 = vor.u32 %v2343_v26, %v2078_v27  ;;  %v2381_v2 = vld [vmem:[#allocation2 + $0xe4] sm:$0xf0] }
 0xa95   :  { %v1001_v12 = vsel %vm999_vm5, %v1000_v57, %v998_v62  ;;  %v2205_v45 = vor.u32 %v2381_v2, %v2204_v54 }
 0xa96   :  { %v2517_v9 = vpop.eup %2516  ;;  %v1003_v20 = vadd.f32 1e-06, %v1001_v12  ;;  %1350 = vmatpush.bf16.msra.mxu1 %v2081_v16  ;;  %v2101_v12 = vor.u32 %v2354_v61, %v2100_v60  ;;  %v2356_v16 = vld [vmem:[#allocation2 + $0xdc] sm:$0xf0]  ;;  %v2284_v60 = vld [vmem:[#allocation2 + $0x18c] sm:$0xf] }
 0xa97   :  { %v1005_v19 = vmul.f32 %v2517_v9, %v2922_v46  ;;  %vm1010_vm6 = vweird.f32 %v2517_v9  ;;  %v2399_v61 = vld [vmem:[#allocation2 + $0x21c] sm:$0xf0] }
 0xa98   :  { %2518 = vrcp.f32 %v1003_v20  ;;  %vm1011_vm8 = vmor %vm1009_vm7, %vm1010_vm6  ;;  %v1029_v38 = vand.u32 2147483648, %v1003_v20  ;;  %v1027_v41 = vand.u32 2147483647, %v1003_v20  ;;  %vm1023_vm11 = vweird.f32 %v1003_v20 }
 0xa99   :  { %v1006_v28 = vsub.f32 1.0, %v1005_v19  ;;  %v2372_v19 = vld [vmem:[#allocation2 + $0x204] sm:$0xf0] }
 0xa9a   :  { %v1030_v47 = vor.u32 1.1754944e-38, %v1029_v38  ;;  %vm1028_vm13 = vcmp.eq.f32.partialorder %v1027_v41, 8.507059e+37  ;;  %v2181_v26 = vor.u32 %v2372_v19, %v2180_v10  ;;  %v2268_v41 = vld [vmem:[#allocation2 + $0x17c] sm:$0xf]  ;;  %v2375_v19 = vld [vmem:[#allocation2 + $0x68] sm:$0xf] }
 0xa9b   :  { %v1007_v29 = vmul.f32 %v2517_v9, %v1006_v28  ;;  %v2116_v28 = vld [vmem:[#allocation2 + $0x4c] sm:$0xf] }
 0xa9d   :  { %v1008_v30 = vadd.f32 %v2517_v9, %v1007_v29  ;;  %v2173_v29 = vor.u32 %v2371_v23, %v2172_v22  ;;  %v2228_v22 = vld [vmem:[#allocation2 + $0x6c] sm:$0xf]  ;;  %v2384_v23 = vld [vmem:[#allocation2 + $0xfc] sm:$0xf0] }
 0xa9e   :  { %v2519_v33 = vpop.eup %2518 }
 0xa9f   :  { %v1012_v34 = vsel %vm1011_vm8, %v2517_v9, %v1008_v30  ;;  %v1019_v35 = vmul.f32 %v2519_v33, %v1003_v20  ;;  %vm1024_vm10 = vweird.f32 %v2519_v33  ;;  %v2094_v9 = vld [vmem:[#allocation2 + $0xc8] sm:$0xf0]  ;;  %v2364_v20 = vld [vmem:[#allocation2 + $0x178] sm:$0xf]  ;;  %v2177_v30 = vor.u32 %v2363_v24, %v2174_v25  ;;  %v2376_v24 = vld [vmem:[#allocation2 + $0x70] sm:$0xf] }
 0xaa0   :  { %v1017_v37 = vsel %vm1014_vm9, %v1016_v13, %v1012_v34  ;;  %vm1025_vm12 = vmor %vm1023_vm11, %vm1024_vm10  ;;  %v2097_v17 = vor.u32 %v2345_v11, %v2094_v9  ;;  %v2185_v27 = vor.u32 %v2364_v20, %v2182_v21  ;;  %v2355_v34 = vld [vmem:[#allocation2 + $0xd4] sm:$0xf0]  ;;  %v2110_v13 = vld [vmem:[#allocation2 + $0xd8] sm:$0xf0]  ;;  %v2293_v9 = vor.u32 %v2400_v8, %v2292_v43 }
 0xaa1   :  { %v1020_v36 = vsub.f32 1.0, %v1019_v35  ;;  %v1032_v49 = vmul.f32 %v1017_v37, %v2906_v39  ;;  %v2369_v39 = vld [vmem:[#allocation2 + $0x1ec] sm:$0xf0]  ;;  %v2347_v35 = vld [vmem:[#allocation2 + $0x48] sm:$0xf]  ;;  %v2121_v37 = vor.u32 %v2348_v31, %v2118_v32  ;;  %v2229_v25 = vor.u32 %v2384_v23, %v2228_v22 }
 0xaa2   :  { %v2157_v62 = vor.u32 %v2369_v39, %v2156_v56  ;;  %v2373_v56 = vld [vmem:[#allocation2 + $0x58] sm:$0xf]  ;;  %v2212_v39 = vld [vmem:[#allocation2 + $0x5c] sm:$0xf] }
 0xaa3   :  { %v1021_v40 = vmul.f32 %v2519_v33, %v1020_v36  ;;  %v1035_v4 = vmul.f32 %v2427_v48, %v1032_v49  ;;  %v2117_v36 = vor.u32 %v2356_v16, %v2116_v28  ;;  %v2389_v49 = vld [vmem:[#allocation2 + $0x180] sm:$0xf]  ;;  %v2392_v11 = vld [vmem:[#allocation2 + $0x198] sm:$0xf]  ;;  %v2222_v20 = vld [vmem:[#allocation2 + $0xf8] sm:$0xf0] }
 0xaa4   :  { %v2225_v21 = vor.u32 %v2375_v19, %v2222_v20  ;;  %v2972_v28 = vld [vmem:[#allocation5] ss:$4 sm:$0xff] }
 0xaa5   :  { %v1022_v42 = vadd.f32 %v2519_v33, %v1021_v40  ;;  %v1038_v57 = vadd.f32 %v2428_v52, %v1035_v4  ;;  %v2113_v40 = vor.u32 %v2347_v35, %v2110_v13  ;;  %v1079_v31 = vperm.slane %v2972_v28, 1 }
 0xaa7   :  { %v1026_v46 = vsel %vm1025_vm12, %v2519_v33, %v1022_v42  ;;  %v2108_v33 = vld [vmem:[#allocation2 + $0x44] sm:$0xf] }
 0xaa8   :  { %v1031_v51 = vsel %vm1028_vm13, %v1030_v47, %v1026_v46  ;;  %v2109_v38 = vor.u32 %v2355_v34, %v2108_v33  ;;  %v2270_v47 = vld [vmem:[#allocation2 + $0x210] sm:$0xf0] }
 0xaa9   :  { %v1033_v5 = vmul.f32 %v1031_v51, %v2913_v7  ;;  %v2346_v7 = vld [vmem:[#allocation2 + $0x40] sm:$0xf]  ;;  %v2273_v46 = vor.u32 %v2389_v49, %v2270_v47  ;;  %v2276_v51 = vld [vmem:[#allocation2 + $0x184] sm:$0xf]  ;;  %v2302_v49 = vld [vmem:[#allocation2 + $0x230] sm:$0xf0] }
 0xaaa   :  { %v2105_v14 = vor.u32 %v2346_v7, %v2102_v6  ;;  %v2286_v7 = vld [vmem:[#allocation2 + $0x220] sm:$0xf0]  ;;  %v1081_v47 = vperm.slane %v2972_v28, 3 }
 0xaab   :  { %v1036_v53 = vmul.f32 %v2427_v48, %v1033_v5  ;;  %v2397_v48 = vld [vmem:[#allocation2 + $0x20c] sm:$0xf0]  ;;  %v2390_v5 = vld [vmem:[#allocation2 + $0x188] sm:$0xf] }
 0xaac   :  { %v2269_v42 = vor.u32 %v2397_v48, %v2268_v41  ;;  %v2401_v41 = vld [vmem:[#allocation2 + $0x22c] sm:$0xf0]  ;;  %v2393_v48 = vld [vmem:[#allocation2 + $0x1a0] sm:$0xf] }
 0xaad   :  { %v1039_v44 = vadd.f32 %v2428_v52, %v1036_v53  ;;  %v2398_v52 = vld [vmem:[#allocation2 + $0x214] sm:$0xf0]  ;;  %v2278_v53 = vld [vmem:[#allocation2 + $0x218] sm:$0xf0] }
 0xaae   :  { %v2277_v4 = vor.u32 %v2398_v52, %v2276_v51  ;;  %v2281_v0 = vor.u32 %v2390_v5, %v2278_v53  ;;  %v2305_v53 = vor.u32 %v2393_v48, %v2302_v49 }
 0xaaf   :  { %v2938_v58 = vpack.c.bf16 %v1039_v44, %v1038_v57  ;;  %v2206_v57 = vld [vmem:[#allocation2 + $0xe8] sm:$0xf0] }
 0xab0   :  { %v2209_v44 = vor.u32 %v2373_v56, %v2206_v57 }
 0xab1   :  { %2186 = vmatmul.msk.bf16.vlgmr.msrb.gmra.mxu0 %vm92_vm0, %v2938_v58  ;;  %2187 = vmatmul.msk.bf16.vlgmr.msrb.gmra.mxu1 %vm92_vm0, %v2938_v58 }
 0xab2   :  { %2188 = vmatmul.msk.bf16.vlgmr.msrb.gmra.mxu3 %vm92_vm0, %v2938_v58  ;;  %2189 = vmatmul.msk.bf16.vlgmr.msra.gmra.mxu2 %vm92_vm0, %v2938_v58 }
 0xab3   :  { %1419 = vmatpush.bf16.msrb.mxu3 %v2165_v59  ;;  %1433 = vmatpush.bf16.msra.mxu2 %v2169_v1  ;;  %v2214_v59 = vld [vmem:[#allocation2 + $0xf0] sm:$0xf0] }
 0xab4   :  { %1391 = vmatpush.bf16.msrb.mxu0 %v2157_v62  ;;  %1405 = vmatpush.bf16.msrb.mxu1 %v2161_v3  ;;  %v2217_v1 = vor.u32 %v2374_v63, %v2214_v59  ;;  %v2391_v62 = vld [vmem:[#allocation2 + $0x190] sm:$0xf]  ;;  %v2285_v3 = vor.u32 %v2399_v61, %v2284_v60  ;;  %v2310_v60 = vld [vmem:[#allocation2 + $0x238] sm:$0xf0]  ;;  %v2236_v61 = vld [vmem:[#allocation2 + $0x74] sm:$0xf] }
 0xab5   :  { %v2289_v6 = vor.u32 %v2391_v62, %v2286_v7  ;;  %v2385_v62 = vld [vmem:[#allocation2 + $0x104] sm:$0xf0]  ;;  %v2238_v7 = vld [vmem:[#allocation2 + $0x108] sm:$0xf0] }
 0xab6   :  { %v2237_v19 = vor.u32 %v2385_v62, %v2236_v61 }
 0xab7   :  { %1420 = vmatpush.bf16.msrb.mxu3 %v2101_v12  ;;  %1434 = vmatpush.bf16.msra.mxu2 %v2105_v14  ;;  %v2294_v12 = vld [vmem:[#allocation2 + $0x228] sm:$0xf0] }
 0xab8   :  { %1392 = vmatpush.bf16.msrb.mxu0 %v2093_v15  ;;  %1406 = vmatpush.bf16.msrb.mxu1 %v2097_v17  ;;  %v2297_v14 = vor.u32 %v2392_v11, %v2294_v12  ;;  %v2220_v15 = vld [vmem:[#allocation2 + $0x64] sm:$0xf]  ;;  %v2383_v17 = vld [vmem:[#allocation2 + $0xf4] sm:$0xf0]  ;;  %v1083_v12 = vperm.slane %v2972_v28, 5 }
 0xab9   :  { %v2221_v10 = vor.u32 %v2383_v17, %v2220_v15 }
 0xac1   :  { %2190 = vmatmul.msk.bf16.vlgmr.msra.gmra.mxu0 %vm92_vm0, %v2938_v58  ;;  %2191 = vmatmul.msk.bf16.vlgmr.msra.gmra.mxu1 %vm92_vm0, %v2938_v58 }
 0xac2   :  { %2192 = vmatmul.msk.bf16.vlgmr.msra.gmra.mxu3 %vm92_vm0, %v2938_v58  ;;  %2193 = vmatmul.msk.bf16.vlgmr.msrb.gmra.mxu2 %vm92_vm0, %v2938_v58 }
 0xac3   :  { %1475 = vmatpush.bf16.msra.mxu3 %v2181_v26  ;;  %1489 = vmatpush.bf16.msrb.mxu2 %v2185_v27  ;;  %v2230_v26 = vld [vmem:[#allocation2 + $0x100] sm:$0xf0] }
 0xac4   :  { %1447 = vmatpush.bf16.msra.mxu0 %v2173_v29  ;;  %1461 = vmatpush.bf16.msra.mxu1 %v2177_v30  ;;  %v2233_v27 = vor.u32 %v2376_v24, %v2230_v26  ;;  %v1078_v30 = vperm.slane %v2972_v28, 0  ;;  %v1085_v26 = vperm.slane %v2972_v28, 7 }
 0xac7   :  { %1476 = vmatpush.bf16.msra.mxu3 %v2117_v36  ;;  %1490 = vmatpush.bf16.msrb.mxu2 %v2121_v37  ;;  %v2300_v37 = vld [vmem:[#allocation2 + $0x19c] sm:$0xf] }
 0xac8   :  { %1448 = vmatpush.bf16.msra.mxu0 %v2109_v38  ;;  %1462 = vmatpush.bf16.msra.mxu1 %v2113_v40  ;;  %v2301_v5 = vor.u32 %v2401_v41, %v2300_v37  ;;  %v2318_v37 = vld [vmem:[#allocation2 + $0x240] sm:$0xf0] }
 0xad1   :  { %2194 = vmatmul.msk.bf16.vlgmr.msrb.gmra.mxu0 %vm92_vm0, %v2938_v58  ;;  %2195 = vmatmul.msk.bf16.vlgmr.msrb.gmra.mxu1 %vm92_vm0, %v2938_v58 }
 0xad2   :  { %2196 = vmatmul.msk.bf16.vlgmr.msrb.gmra.mxu3 %vm92_vm0, %v2938_v58  ;;  %2197 = vmatmul.msk.bf16.vlgmr.msra.gmra.mxu2 %vm92_vm0, %v2938_v58 }
 0xad3   :  { %1743 = vmatpush.bf16.xpose.msrb.mxu0 %v2269_v42  ;;  %1757 = vmatpush.bf16.xpose.msrb.mxu1 %v2273_v46  ;;  %v1080_v42 = vperm.slane %v2972_v28, 2 }
 0xad4   :  { %1771 = vmatpush.bf16.xpose.msrb.mxu3 %v2277_v4  ;;  %1785 = vmatpush.bf16.xpose.msra.mxu2 %v2281_v0 }
 0xadb   :  { %1744 = vmatpush.bf16.xpose.msrb.mxu0 %v2205_v45  ;;  %1758 = vmatpush.bf16.xpose.msrb.mxu1 %v2209_v44  ;;  %v2308_v44 = vld [vmem:[#allocation2 + $0x1a4] sm:$0xf] }
 0xadc   :  { %1786 = vmatpush.bf16.xpose.msra.mxu2 %v2217_v1  ;;  %v2394_v1 = vld [vmem:[#allocation2 + $0x1a8] sm:$0xf] }
 0xadd   :  { %v2313_v15 = vor.u32 %v2394_v1, %v2310_v60 }
 0xae1   :  { %2198 = vmatmul.msk.bf16.vlgmr.msra.gmra.mxu0 %vm92_vm0, %v2938_v58  ;;  %2199 = vmatmul.msk.bf16.vlgmr.msra.gmra.mxu1 %vm92_vm0, %v2938_v58 }
 0xae2   :  { %2200 = vmatmul.msk.bf16.vlgmr.msra.gmra.mxu3 %vm92_vm0, %v2938_v58  ;;  %2201 = vmatmul.msk.bf16.vlgmr.msrb.gmra.mxu2 %vm92_vm0, %v2938_v58  ;;  %v2213_v58 = vor.u32 %v2382_v18, %v2212_v39  ;;  %v2402_v39 = vld [vmem:[#allocation2 + $0x234] sm:$0xf0] }
 0xae3   :  { %1799 = vmatpush.bf16.xpose.msra.mxu0 %v2285_v3  ;;  %1813 = vmatpush.bf16.xpose.msra.mxu1 %v2289_v6  ;;  %v2377_v3 = vld [vmem:[#allocation2 + $0x78] sm:$0xf] }
 0xae4   :  { %1772 = vmatpush.bf16.xpose.msrb.mxu3 %v2213_v58  ;;  %1841 = vmatpush.bf16.xpose.msrb.mxu2 %v2297_v14  ;;  %v2309_v14 = vor.u32 %v2402_v39, %v2308_v44  ;;  %v2241_v20 = vor.u32 %v2377_v3, %v2238_v7  ;;  %v2404_v44 = vld [vmem:[#allocation2 + $0x244] sm:$0xf0]  ;;  %v2396_v39 = vld [vmem:[#allocation2 + $0x1b8] sm:$0xf]  ;;  %v2254_v3 = vld [vmem:[#allocation2 + $0x118] sm:$0xf0] }
 0xaeb   :  { %1800 = vmatpush.bf16.xpose.msra.mxu0 %v2221_v10  ;;  %1814 = vmatpush.bf16.xpose.msra.mxu1 %v2225_v21 }
 0xaec   :  { %1827 = vmatpush.bf16.xpose.msra.mxu3 %v2293_v9  ;;  %1842 = vmatpush.bf16.xpose.msrb.mxu2 %v2233_v27  ;;  %v1082_v9 = vperm.slane %v2972_v28, 4 }
 0xaf4   :  { %1828 = vmatpush.bf16.xpose.msra.mxu3 %v2229_v25  ;;  %v1084_v25 = vperm.slane %v2972_v28, 6 }
 0xb2e   :  { %v1282_v16 = vpop.f32.mrf.mxu0  ;;  %v1296_v29 = vpop.f32.mrf.mxu1 }
 0xb2f   :  { %v1283_v32 = vadd.f32 %v1282_v16, %v1078_v30  ;;  %v1297_v33 = vadd.f32 %v1296_v29, %v1079_v31  ;;  %v2244_v29 = vld [vmem:[#allocation2 + $0x7c] sm:$0xf] }
 0xb31   :  { %v1497_v46 = vmax.f32 %v1283_v32, 0.0  ;;  %v1498_v51 = vmax.f32 %v1297_v33, 0.0  ;;  %v2378_v33 = vld [vmem:[#allocation2 + $0x80] sm:$0xf] }
 0xb35   :  { %v1310_v34 = vpop.f32.mrf.mxu3  ;;  %v1324_v35 = vpop.f32.mrf.mxu2 }
 0xb36   :  { %v1284_v13 = vpop.f32.mrf.mxu0  ;;  %v1298_v36 = vpop.f32.mrf.mxu1  ;;  %v1311_v2 = vadd.f32 %v1310_v34, %v1080_v42  ;;  %v1325_v45 = vadd.f32 %v1324_v35, %v1081_v47  ;;  %v2246_v34 = vld [vmem:[#allocation2 + $0x110] sm:$0xf0]  ;;  %v2316_v35 = vld [vmem:[#allocation2 + $0x1ac] sm:$0xf] }
 0xb37   :  { %v1285_v38 = vadd.f32 %v1284_v13, %v1078_v30  ;;  %v1299_v40 = vadd.f32 %v1298_v36, %v1079_v31  ;;  %v2386_v30 = vld [vmem:[#allocation2 + $0x10c] sm:$0xf0]  ;;  %v2403_v13 = vld [vmem:[#allocation2 + $0x23c] sm:$0xf0]  ;;  %v2249_v28 = vor.u32 %v2378_v33, %v2246_v34 }
 0xb38   :  { %v1499_v6 = vmax.f32 %v1311_v2, 0.0  ;;  %v1500_v43 = vmax.f32 %v1325_v45, 0.0  ;;  %v2395_v36 = vld [vmem:[#allocation2 + $0x1b0] sm:$0xf]  ;;  %v2245_v49 = vor.u32 %v2386_v30, %v2244_v29 }
 0xb39   :  { %v1513_v52 = vmax.f32 %v1285_v38, 0.0  ;;  %v1514_v4 = vmax.f32 %v1299_v40, 0.0 }
 0xb3b   :  { %v1529_v0 = vpack.c.bf16 %v1513_v52, %v1497_v46  ;;  %v1530_v54 = vpack.c.bf16 %v1514_v4, %v1498_v51  ;;  %v2317_v46 = vor.u32 %v2403_v13, %v2316_v35  ;;  %v2321_v51 = vor.u32 %v2395_v36, %v2318_v37 }
 0xb3d   :  { %v1312_v56 = vpop.f32.mrf.mxu3  ;;  %v1326_v57 = vpop.f32.mrf.mxu2  ;;  %1745 = vmatmul.bf16.vlgmr.msrb.gmra.mxu0 %v1529_v0  ;;  %1759 = vmatmul.bf16.vlgmr.msrb.gmra.mxu1 %v1530_v54  ;;  %v2982_v0 = vld [vmem:[#allocation5 + $0x20] ss:$4 sm:$0xff] }
 0xb3e   :  { %v1313_v18 = vadd.f32 %v1312_v56, %v1080_v42  ;;  %v1327_v63 = vadd.f32 %v1326_v57, %v1081_v47  ;;  %v1338_v58 = vpop.f32.mrf.mxu0  ;;  %v1352_v59 = vpop.f32.mrf.mxu1  ;;  %1855 = vmatpush.bf16.xpose.msrb.mxu0 %v2301_v5  ;;  %1869 = vmatpush.bf16.xpose.msrb.mxu1 %v2305_v53  ;;  %v2324_v54 = vld [vmem:[#allocation2 + $0x1b4] sm:$0xf]  ;;  %v1086_v7 = vperm.slane %v2982_v0, 0  ;;  %v1089_v29 = vperm.slane %v2982_v0, 3 }
 0xb3f   :  { %v1339_v21 = vadd.f32 %v1338_v58, %v1082_v9  ;;  %v1353_v22 = vadd.f32 %v1352_v59, %v1083_v12  ;;  %v2387_v58 = vld [vmem:[#allocation2 + $0x114] sm:$0xf0]  ;;  %v2379_v59 = vld [vmem:[#allocation2 + $0x88] sm:$0xf] }
 0xb40   :  { %v1515_v8 = vmax.f32 %v1313_v18, 0.0  ;;  %v1516_v11 = vmax.f32 %v1327_v63, 0.0  ;;  %v2326_v18 = vld [vmem:[#allocation2 + $0x248] sm:$0xf0]  ;;  %v2252_v63 = vld [vmem:[#allocation2 + $0x84] sm:$0xf] }
 0xb41   :  { %v1501_v38 = vmax.f32 %v1339_v21, 0.0  ;;  %v1502_v40 = vmax.f32 %v1353_v22, 0.0  ;;  %v2260_v22 = vld [vmem:[#allocation2 + $0x8c] sm:$0xf] }
 0xb42   :  { %v1531_v17 = vpack.c.bf16 %v1515_v8, %v1499_v6  ;;  %v1532_v10 = vpack.c.bf16 %v1516_v11, %v1500_v43  ;;  %v1087_v6 = vperm.slane %v2982_v0, 1  ;;  %v2325_v43 = vor.u32 %v2404_v44, %v2324_v54 }
 0xb43   :  { %v2329_v8 = vor.u32 %v2396_v39, %v2326_v18 }
 0xb44   :  { %1773 = vmatmul.bf16.vlgmr.msrb.gmra.mxu3 %v1531_v17  ;;  %1787 = vmatmul.bf16.vlgmr.msra.gmra.mxu2 %v1532_v10 }
 0xb45   :  { %v1366_v23 = vpop.f32.mrf.mxu3  ;;  %v1380_v24 = vpop.f32.mrf.mxu2  ;;  %1883 = vmatpush.bf16.xpose.msrb.mxu3 %v2309_v14  ;;  %1897 = vmatpush.bf16.xpose.msra.mxu2 %v2313_v15  ;;  %v2257_v14 = vor.u32 %v2379_v59, %v2254_v3  ;;  %v1093_v59 = vperm.slane %v2982_v0, 7 }
 0xb46   :  { %v1340_v27 = vpop.f32.mrf.mxu0  ;;  %v1354_v16 = vpop.f32.mrf.mxu1  ;;  %1856 = vmatpush.bf16.xpose.msrb.mxu0 %v2237_v19  ;;  %1870 = vmatpush.bf16.xpose.msrb.mxu1 %v2241_v20  ;;  %v1367_v52 = vadd.f32 %v1366_v23, %v1084_v25  ;;  %v1381_v4 = vadd.f32 %v1380_v24, %v1085_v26 }
 0xb47   :  { %v1341_v31 = vadd.f32 %v1340_v27, %v1082_v9  ;;  %v1355_v32 = vadd.f32 %v1354_v16, %v1083_v12  ;;  %v2253_v12 = vor.u32 %v2387_v58, %v2252_v63  ;;  %v2262_v27 = vld [vmem:[#allocation2 + $0x120] sm:$0xf0]  ;;  %v1088_v16 = vperm.slane %v2982_v0, 2 }
 0xb48   :  { %v1503_v1 = vmax.f32 %v1367_v52, 0.0  ;;  %v1504_v60 = vmax.f32 %v1381_v4, 0.0  ;;  %v1090_v4 = vperm.slane %v2982_v0, 4  ;;  %v1092_v58 = vperm.slane %v2982_v0, 6 }
 0xb49   :  { %v1517_v41 = vmax.f32 %v1341_v31, 0.0  ;;  %v1518_v48 = vmax.f32 %v1355_v32, 0.0 }
 0xb4b   :  { %v1533_v42 = vpack.c.bf16 %v1517_v41, %v1501_v38  ;;  %v1534_v47 = vpack.c.bf16 %v1518_v48, %v1502_v40 }
 0xb4d   :  { %v1368_v5 = vpop.f32.mrf.mxu3  ;;  %v1382_v53 = vpop.f32.mrf.mxu2  ;;  %1801 = vmatmul.bf16.vlgmr.msra.gmra.mxu0 %v1533_v42  ;;  %1815 = vmatmul.bf16.vlgmr.msra.gmra.mxu1 %v1534_v47 }
 0xb4e   :  { %v1369_v2 = vadd.f32 %v1368_v5, %v1084_v25  ;;  %v1383_v45 = vadd.f32 %v1382_v53, %v1085_v26  ;;  %v1394_v56 = vpop.f32.mrf.mxu0  ;;  %v1408_v57 = vpop.f32.mrf.mxu1  ;;  %1884 = vmatpush.bf16.xpose.msrb.mxu3 %v2245_v49  ;;  %1898 = vmatpush.bf16.xpose.msra.mxu2 %v2249_v28  ;;  %v2388_v25 = vld [vmem:[#allocation2 + $0x11c] sm:$0xf0]  ;;  %v2380_v26 = vld [vmem:[#allocation2 + $0x90] sm:$0xf]  ;;  %v1091_v5 = vperm.slane %v2982_v0, 5 }
 0xb4f   :  { %1911 = vmatpush.bf16.xpose.msra.mxu0 %v2317_v46  ;;  %1925 = vmatpush.bf16.xpose.msra.mxu1 %v2321_v51  ;;  %v1395_v15 = vadd.f32 %v1394_v56, %v1086_v7  ;;  %v1409_v17 = vadd.f32 %v1408_v57, %v1087_v6  ;;  %v2261_v34 = vor.u32 %v2388_v25, %v2260_v22 }
 0xb50   :  { %v1519_v61 = vmax.f32 %v1369_v2, 0.0  ;;  %v1520_v62 = vmax.f32 %v1383_v45, 0.0  ;;  %v2265_v35 = vor.u32 %v2380_v26, %v2262_v27 }
 0xb51   :  { %v1505_v30 = vmax.f32 %v1395_v15, 0.0  ;;  %v1506_v31 = vmax.f32 %v1409_v17, 0.0 }
 0xb52   :  { %v1535_v11 = vpack.c.bf16 %v1519_v61, %v1503_v1  ;;  %v1536_v9 = vpack.c.bf16 %v1520_v62, %v1504_v60 }
 0xb54   :  { %1829 = vmatmul.bf16.vlgmr.msra.gmra.mxu3 %v1535_v11  ;;  %1843 = vmatmul.bf16.vlgmr.msrb.gmra.mxu2 %v1536_v9 }
 0xb55   :  { %v1422_v10 = vpop.f32.mrf.mxu3  ;;  %v1436_v19 = vpop.f32.mrf.mxu2 }
 0xb56   :  { %1939 = vmatpush.bf16.xpose.msra.mxu3 %v2325_v43  ;;  %1953 = vmatpush.bf16.xpose.msrb.mxu2 %v2329_v8  ;;  %v1396_v20 = vpop.f32.mrf.mxu0  ;;  %v1410_v21 = vpop.f32.mrf.mxu1  ;;  %v1423_v37 = vadd.f32 %v1422_v10, %v1088_v16  ;;  %v1437_v38 = vadd.f32 %v1436_v19, %v1089_v29 }
 0xb57   :  { %v1397_v23 = vadd.f32 %v1396_v20, %v1086_v7  ;;  %v1411_v24 = vadd.f32 %v1410_v21, %v1087_v6  ;;  %1912 = vmatpush.bf16.xpose.msra.mxu0 %v2253_v12  ;;  %1926 = vmatpush.bf16.xpose.msra.mxu1 %v2257_v14 }
 0xb58   :  { %v1507_v47 = vmax.f32 %v1423_v37, 0.0  ;;  %v1508_v46 = vmax.f32 %v1437_v38, 0.0 }
 0xb59   :  { %v1521_v32 = vmax.f32 %v1397_v23, 0.0  ;;  %v1522_v33 = vmax.f32 %v1411_v24, 0.0 }
 0xb5b   :  { %v1537_v13 = vpack.c.bf16 %v1521_v32, %v1505_v30  ;;  %v1538_v36 = vpack.c.bf16 %v1522_v33, %v1506_v31 }
 0xb5d   :  { %v1424_v40 = vpop.f32.mrf.mxu3  ;;  %v1438_v41 = vpop.f32.mrf.mxu2  ;;  %1857 = vmatmul.bf16.vlgmr.msrb.gmra.mxu0 %v1537_v13  ;;  %1871 = vmatmul.bf16.vlgmr.msrb.gmra.mxu1 %v1538_v36 }
 0xb5e   :  { %v1425_v48 = vadd.f32 %v1424_v40, %v1088_v16  ;;  %v1439_v49 = vadd.f32 %v1438_v41, %v1089_v29  ;;  %v1450_v28 = vpop.f32.mrf.mxu0  ;;  %v1464_v42 = vpop.f32.mrf.mxu1  ;;  %1940 = vmatpush.bf16.xpose.msra.mxu3 %v2261_v34  ;;  %1954 = vmatpush.bf16.xpose.msrb.mxu2 %v2265_v35 }
 0xb5f   :  { %v1451_v2 = vadd.f32 %v1450_v28, %v1090_v4  ;;  %v1465_v45 = vadd.f32 %v1464_v42, %v1091_v5 }
 0xb60   :  { %v1523_v51 = vmax.f32 %v1425_v48, 0.0  ;;  %v1524_v52 = vmax.f32 %v1439_v49, 0.0 }
 0xb61   :  { %v1509_v1 = vmax.f32 %v1451_v2, 0.0  ;;  %v1510_v60 = vmax.f32 %v1465_v45, 0.0 }
 0xb62   :  { %v1539_v53 = vpack.c.bf16 %v1523_v51, %v1507_v47  ;;  %v1540_v54 = vpack.c.bf16 %v1524_v52, %v1508_v46 }
 0xb64   :  { %1885 = vmatmul.bf16.vlgmr.msrb.gmra.mxu3 %v1539_v53  ;;  %1899 = vmatmul.bf16.vlgmr.msra.gmra.mxu2 %v1540_v54 }
 0xb65   :  { %v1478_v56 = vpop.f32.mrf.mxu3  ;;  %v1492_v57 = vpop.f32.mrf.mxu2 }
 0xb66   :  { %v1452_v44 = vpop.f32.mrf.mxu0  ;;  %v1466_v39 = vpop.f32.mrf.mxu1  ;;  %v1479_v6 = vadd.f32 %v1478_v56, %v1092_v58  ;;  %v1493_v43 = vadd.f32 %v1492_v57, %v1093_v59 }
 0xb67   :  { %v1453_v18 = vadd.f32 %v1452_v44, %v1090_v4  ;;  %v1467_v63 = vadd.f32 %v1466_v39, %v1091_v5 }
 0xb68   :  { %v1511_v14 = vmax.f32 %v1479_v6, 0.0  ;;  %v1512_v15 = vmax.f32 %v1493_v43, 0.0 }
 0xb69   :  { %v1525_v61 = vmax.f32 %v1453_v18, 0.0  ;;  %v1526_v62 = vmax.f32 %v1467_v63, 0.0 }
 0xb6b   :  { %v1541_v3 = vpack.c.bf16 %v1525_v61, %v1509_v1  ;;  %v1542_v7 = vpack.c.bf16 %v1526_v62, %v1510_v60 }
 0xb6d   :  { %v1480_v8 = vpop.f32.mrf.mxu3  ;;  %v1494_v11 = vpop.f32.mrf.mxu2  ;;  %1913 = vmatmul.bf16.vlgmr.msra.gmra.mxu0 %v1541_v3  ;;  %1927 = vmatmul.bf16.vlgmr.msra.gmra.mxu1 %v1542_v7 }
 0xb6e   :  { %v1481_v9 = vadd.f32 %v1480_v8, %v1092_v58  ;;  %v1495_v12 = vadd.f32 %v1494_v11, %v1093_v59 }
 0xb70   :  { %v1527_v17 = vmax.f32 %v1481_v9, 0.0  ;;  %v1528_v10 = vmax.f32 %v1495_v12, 0.0 }
 0xb72   :  { %v1543_v19 = vpack.c.bf16 %v1527_v17, %v1511_v14  ;;  %v1544_v0 = vpack.c.bf16 %v1528_v10, %v1512_v15  ;;  %v2429_v14 = vld [vmem:[#allocation5 + $0x15] ss:$0 sm:$0xff] }
 0xb74   :  { %1941 = vmatmul.bf16.vlgmr.msra.gmra.mxu3 %v1543_v19  ;;  %1955 = vmatmul.bf16.vlgmr.msrb.gmra.mxu2 %v1544_v0 }
 0xbba   :  { %v1746_v20 = vpop.f32.mrf.mxu0  ;;  %v1760_v21 = vpop.f32.mrf.mxu1 }
 0xbbb   :  { %v1761_v16 = vadd.f32 %v1760_v21, %v1746_v20 }
 0xbc2   :  { %v1748_v22 = vpop.f32.mrf.mxu0  ;;  %v1762_v23 = vpop.f32.mrf.mxu1 }
 0xbc3   :  { %v1763_v34 = vadd.f32 %v1762_v23, %v1748_v22 }
 0xbc7   :  { %v1774_v24 = vpop.f32.mrf.mxu3  ;;  %v1788_v25 = vpop.f32.mrf.mxu2 }
 0xbc8   :  { %v1775_v29 = vadd.f32 %v1774_v24, %v1761_v16 }
 0xbca   :  { %v1802_v26 = vpop.f32.mrf.mxu0  ;;  %v1816_v27 = vpop.f32.mrf.mxu1  ;;  %v1789_v32 = vadd.f32 %v1788_v25, %v1775_v29 }
 0xbcc   :  { %v1803_v13 = vadd.f32 %v1802_v26, %v1789_v32 }
 0xbce   :  { %v1817_v40 = vadd.f32 %v1816_v27, %v1803_v13 }
 0xbcf   :  { %v1776_v30 = vpop.f32.mrf.mxu3  ;;  %v1790_v31 = vpop.f32.mrf.mxu2 }
 0xbd0   :  { %v1777_v36 = vadd.f32 %v1776_v30, %v1763_v34 }
 0xbd2   :  { %v1804_v33 = vpop.f32.mrf.mxu0  ;;  %v1818_v35 = vpop.f32.mrf.mxu1  ;;  %v1791_v41 = vadd.f32 %v1790_v31, %v1777_v36 }
 0xbd4   :  { %v1805_v28 = vadd.f32 %v1804_v33, %v1791_v41 }
 0xbd6   :  { %v1819_v52 = vadd.f32 %v1818_v35, %v1805_v28 }
 0xbd7   :  { %v1830_v37 = vpop.f32.mrf.mxu3  ;;  %v1844_v38 = vpop.f32.mrf.mxu2 }
 0xbd8   :  { %v1831_v49 = vadd.f32 %v1830_v37, %v1817_v40 }
 0xbda   :  { %v1858_v48 = vpop.f32.mrf.mxu0  ;;  %v1872_v42 = vpop.f32.mrf.mxu1  ;;  %v1845_v51 = vadd.f32 %v1844_v38, %v1831_v49 }
 0xbdc   :  { %v1859_v5 = vadd.f32 %v1858_v48, %v1845_v51 }
 0xbde   :  { %v1873_v45 = vadd.f32 %v1872_v42, %v1859_v5 }
 0xbdf   :  { %v1832_v47 = vpop.f32.mrf.mxu3  ;;  %v1846_v46 = vpop.f32.mrf.mxu2 }
 0xbe0   :  { %v1833_v53 = vadd.f32 %v1832_v47, %v1819_v52 }
 0xbe2   :  { %v1860_v4 = vpop.f32.mrf.mxu0  ;;  %v1847_v56 = vadd.f32 %v1846_v46, %v1833_v53  ;;  %v1874_v57 = vpop.f32.mrf.mxu1 }
 0xbe4   :  { %v1861_v39 = vadd.f32 %v1860_v4, %v1847_v56 }
 0xbe6   :  { %v1875_v1 = vadd.f32 %v1874_v57, %v1861_v39 }
 0xbe7   :  { %v1886_v54 = vpop.f32.mrf.mxu3  ;;  %v1900_v2 = vpop.f32.mrf.mxu2 }
 0xbe8   :  { %v1887_v44 = vadd.f32 %v1886_v54, %v1873_v45 }
 0xbea   :  { %v1914_v18 = vpop.f32.mrf.mxu0  ;;  %v1901_v63 = vadd.f32 %v1900_v2, %v1887_v44  ;;  %v1928_v62 = vpop.f32.mrf.mxu1 }
 0xbec   :  { %v1915_v60 = vadd.f32 %v1914_v18, %v1901_v63 }
 0xbee   :  { %v1929_v3 = vadd.f32 %v1928_v62, %v1915_v60 }
 0xbef   :  { %v1888_v58 = vpop.f32.mrf.mxu3  ;;  %v1902_v59 = vpop.f32.mrf.mxu2 }
 0xbf0   :  { %v1889_v61 = vadd.f32 %v1888_v58, %v1875_v1 }
 0xbf2   :  { %v1903_v7 = vadd.f32 %v1902_v59, %v1889_v61  ;;  %v1916_v6 = vpop.f32.mrf.mxu0  ;;  %v1930_v17 = vpop.f32.mrf.mxu1 }
 0xbf4   :  { %v1917_v9 = vadd.f32 %v1916_v6, %v1903_v7 }
 0xbf6   :  { %v1931_v10 = vadd.f32 %v1930_v17, %v1917_v9 }
 0xbf7   :  { %v1942_v43 = vpop.f32.mrf.mxu3  ;;  %v1956_v8 = vpop.f32.mrf.mxu2 }
 0xbf8   :  { %v1943_v11 = vadd.f32 %v1942_v43, %v1929_v3 }
 0xbfa   :  { %v1957_v12 = vadd.f32 %v1956_v8, %v1943_v11 }
 0xbfc   :  { %v1961_v15 = vadd.f32 %v1957_v12, %v2895_v55 }
 0xbfe   :  { %v1965_v19 = vadd.f32 %v2429_v14, %v1961_v15 }
 0xbff   :  { %v1944_v0 = vpop.f32.mrf.mxu3  ;;  %v1958_v21 = vpop.f32.mrf.mxu2 }
 0xc00   :  { %1967 = vst.msk [vmem:[#allocation7] sm:$0xff] %vm92_vm0, %v1965_v19  ;;  %v1945_v20 = vadd.f32 %v1944_v0, %v1931_v10 }
 0xc02   :  { %v1959_v22 = vadd.f32 %v1958_v21, %v1945_v20 }
 0xc04   :  { %v1962_v23 = vadd.f32 %v1959_v22, %v2900_v50 }
 0xc06   :  { %v1966_v55 = vadd.f32 %v2429_v14, %v1962_v23 }
 0xc08   :  { %1968 = vst.msk [vmem:[#allocation7 + $0x8] sm:$0xff] %vm92_vm0, %v1966_v55 }
 0xc09   :  { %1981 = dma.vmem_to_hbm [thread:$0]  %s1974_s10, 256, %s1976_s12, [#allocation4], %s2607_s13, %s2607_s13, %s2608_s14  }
 0xc0a   :  { %2596 = dma.done.wait [#allocation4], 256  }
 0xc0b   :  { %2597 = vsyncadd [#allocation4], 4294967040 }
 0xc0c   :  { %1990 = vsyncpa [#allocation3], 1 }
 0xc0d   :  { %1991 = vsyncpa [#allocation6], 1 }
 0xc0e   :  { %1992 = vsyncpa [#allocation4], 1 }

</bundles_post_ra>
